<compile_context>
chip_gen: v5e
topology: v5e:2x2
jax: 0.10.0
libtpu: 0.0.40
codegen_flags: <defaults>
</compile_context>

<pallas_src>
import jax
import jax.numpy as jnp
from jax.experimental import pallas as pl
from jax.experimental.pallas import tpu as pltpu

LATENT = 100
LATENT_PAD = 128          # 100 -> 128 (one full lane group)
HID1 = 256
HID2 = 512
OUT = 784
OUT_PAD = 896             # 784 -> 7 * 128 (lane-dense stores)


def generator_kernel(x_ref, w1_ref, w2_ref, w3_ref, o_ref):
    # Layer 1: (TM,128)bf16 @ (128,256)bf16 -> f32 acc -> ReLU (f32) -> bf16
    h1 = jnp.dot(x_ref[...], w1_ref[...], preferred_element_type=jnp.float32)
    h1 = jnp.maximum(h1, 0.0).astype(jnp.bfloat16)
    # Layer 2: (TM,256) @ (256,512) -> ReLU
    h2 = jnp.dot(h1, w2_ref[...], preferred_element_type=jnp.float32)
    h2 = jnp.maximum(h2, 0.0).astype(jnp.bfloat16)
    # Layer 3: (TM,512) @ (512,896) -> Tanh (f32)
    h3 = jnp.dot(h2, w3_ref[...], preferred_element_type=jnp.float32)
    o_ref[...] = jnp.tanh(h3).astype(o_ref.dtype)


def generator_forward(x, w1_t, w2_t, w3_t):
    """x: (B, 100) f32; w*_t: transposed weights (in, out), f32.

    Returns (B, 784) f32.
    """
    B = x.shape[0]

    # Batch tile: up to 256 rows per grid step (matches v6e/v7x 256-wide MXU),
    # rounded to a multiple of 8 sublanes for small batches.
    TM = 256 if B >= 256 else max(8, ((B + 7) // 8) * 8)
    B_pad = ((B + TM - 1) // TM) * TM

    # Pad + cast operands outside the kernel (zeros contribute exactly 0).
    x_p = jnp.pad(x, ((0, B_pad - B), (0, LATENT_PAD - LATENT))).astype(jnp.bfloat16)
    w1_p = jnp.pad(w1_t, ((0, LATENT_PAD - LATENT), (0, 0))).astype(jnp.bfloat16)
    w2_p = w2_t.astype(jnp.bfloat16)
    w3_p = jnp.pad(w3_t, ((0, 0), (0, OUT_PAD - OUT))).astype(jnp.bfloat16)

    out = pl.pallas_call(
        generator_kernel,
        out_shape=jax.ShapeDtypeStruct((B_pad, OUT_PAD), jnp.float32),
        grid=(B_pad // TM,),
        in_specs=[
            pl.BlockSpec((TM, LATENT_PAD), lambda i: (i, 0)),     # x: tiled over batch
            pl.BlockSpec(w1_p.shape, lambda i: (0, 0)),           # weights pinned in VMEM
            pl.BlockSpec(w2_p.shape, lambda i: (0, 0)),
            pl.BlockSpec(w3_p.shape, lambda i: (0, 0)),
        ],
        out_specs=pl.BlockSpec((TM, OUT_PAD), lambda i: (i, 0)),
        compiler_params=pltpu.CompilerParams(
            dimension_semantics=("parallel",),   # batch tiles shard across TCs (v7x)
        ),
    )(x_p, w1_p, w2_p, w3_p)

    return out[:B, :OUT]


def init_params(key):
    """Deterministic init mirroring nn.Linear default (Kaiming-uniform-ish).

    PyTorch stores Linear weight as (out, in); we build them that way and then
    transpose so the kernel computes x @ W^T as x @ w_t.
    """
    k1, k2, k3 = jax.random.split(key, 3)

    def linear_weight(k, out_f, in_f):
        bound = 1.0 / jnp.sqrt(in_f)
        return jax.random.uniform(k, (out_f, in_f), jnp.float32, -bound, bound)

    w1 = linear_weight(k1, HID1, LATENT)   # (out, in) like PyTorch
    w2 = linear_weight(k2, HID2, HID1)
    w3 = linear_weight(k3, OUT, HID2)
    return w1.T, w2.T, w3.T                # (in, out) for the kernel


def reference_forward(x, w1_t, w2_t, w3_t):
    """Mirrors the kernel's bf16-operand / f32-accumulate numerics."""
    xb = x.astype(jnp.bfloat16)
    w1b = w1_t.astype(jnp.bfloat16)
    w2b = w2_t.astype(jnp.bfloat16)
    w3b = w3_t.astype(jnp.bfloat16)
    h1 = jnp.maximum(jnp.dot(xb, w1b, preferred_element_type=jnp.float32), 0.0)
    h2 = jnp.maximum(
        jnp.dot(h1.astype(jnp.bfloat16), w2b, preferred_element_type=jnp.float32), 0.0
    )
    h3 = jnp.dot(h2.astype(jnp.bfloat16), w3b, preferred_element_type=jnp.float32)
    return jnp.tanh(h3)


if __name__ == "__main__":
    key = jax.random.PRNGKey(0)
    kx, kw = jax.random.split(key)

    B = 8  # small batch (latent noise, like torch.randn(B, 100))
    x = jax.random.normal(kx, (B, LATENT), dtype=jnp.float32)
    w1_t, w2_t, w3_t = init_params(kw)

    out = generator_forward(x, w1_t, w2_t, w3_t)
    out = jax.block_until_ready(out)

    ref = reference_forward(x, w1_t, w2_t, w3_t)
    assert out.shape == (B, OUT), out.shape
    assert jnp.allclose(out, ref, atol=2e-2, rtol=2e-2), "mismatch vs reference"

    print("KERNEL_OK")
</pallas_src>

<mosaic_0001>
module attributes {stable_mosaic.version = 11 : i64} {
  func.func @generator_kernel(%arg0: i32, %arg1: memref<8x128xbf16, #tpu.memory_space<vmem>>, %arg2: memref<128x256xbf16, #tpu.memory_space<vmem>>, %arg3: memref<256x512xbf16, #tpu.memory_space<vmem>>, %arg4: memref<512x896xbf16, #tpu.memory_space<vmem>>, %arg5: memref<8x896xf32, #tpu.memory_space<vmem>>) attributes {dimension_semantics = [#tpu.dimension_semantics<parallel>], iteration_bounds = array<i64: 1>, scalar_prefetch = 0 : i64, scratch_operands = 0 : i64, tpu.core_type = #tpu.core_type<tc>, window_params = [{transform_indices = @transform_0, window_bounds = array<i64: 8, 128>}, {pipeline_mode = #tpu.pipeline_mode<synchronous>, transform_indices = @transform_1, window_bounds = array<i64: 128, 256>}, {pipeline_mode = #tpu.pipeline_mode<synchronous>, transform_indices = @transform_2, window_bounds = array<i64: 256, 512>}, {pipeline_mode = #tpu.pipeline_mode<synchronous>, transform_indices = @transform_3, window_bounds = array<i64: 512, 896>}, {transform_indices = @transform_4, window_bounds = array<i64: 8, 896>}]} {
    %c0 = arith.constant 0 : index
    %c0_0 = arith.constant 0 : index
    %0 = vector.load %arg1[%c0, %c0_0] : memref<8x128xbf16, #tpu.memory_space<vmem>>, vector<8x128xbf16>
    %c0_1 = arith.constant 0 : index
    %c0_2 = arith.constant 0 : index
    %1 = vector.load %arg2[%c0_1, %c0_2] : memref<128x256xbf16, #tpu.memory_space<vmem>>, vector<128x256xbf16>
    %cst = arith.constant dense<0.000000e+00> : vector<8x256xf32>
    %2 = tpu.matmul %0, %1, %cst {dimension_numbers = #tpu.dot_dimension_numbers<[1], [0], [0], [1], [0, 0, 1, 1], [], []>} : vector<8x128xbf16>, vector<128x256xbf16>, vector<8x256xf32> -> vector<8x256xf32>
    %cst_3 = arith.constant 0.000000e+00 : f32
    %3 = vector.broadcast %cst_3 : f32 to vector<8x256xf32>
    %4 = arith.maximumf %2, %3 : vector<8x256xf32>
    %5 = arith.truncf %4 : vector<8x256xf32> to vector<8x256xbf16>
    %c0_4 = arith.constant 0 : index
    %c0_5 = arith.constant 0 : index
    %6 = vector.load %arg3[%c0_4, %c0_5] : memref<256x512xbf16, #tpu.memory_space<vmem>>, vector<256x512xbf16>
    %cst_6 = arith.constant dense<0.000000e+00> : vector<8x512xf32>
    %7 = tpu.matmul %5, %6, %cst_6 {dimension_numbers = #tpu.dot_dimension_numbers<[1], [0], [0], [1], [0, 0, 1, 1], [], []>} : vector<8x256xbf16>, vector<256x512xbf16>, vector<8x512xf32> -> vector<8x512xf32>
    %cst_7 = arith.constant 0.000000e+00 : f32
    %8 = vector.broadcast %cst_7 : f32 to vector<8x512xf32>
    %9 = arith.maximumf %7, %8 : vector<8x512xf32>
    %10 = arith.truncf %9 : vector<8x512xf32> to vector<8x512xbf16>
    %c0_8 = arith.constant 0 : index
    %c0_9 = arith.constant 0 : index
    %11 = vector.load %arg4[%c0_8, %c0_9] : memref<512x896xbf16, #tpu.memory_space<vmem>>, vector<512x896xbf16>
    %cst_10 = arith.constant dense<0.000000e+00> : vector<8x896xf32>
    %12 = tpu.matmul %10, %11, %cst_10 {dimension_numbers = #tpu.dot_dimension_numbers<[1], [0], [0], [1], [0, 0, 1, 1], [], []>} : vector<8x512xbf16>, vector<512x896xbf16>, vector<8x896xf32> -> vector<8x896xf32>
    %13 = math.tanh %12 : vector<8x896xf32>
    %c0_11 = arith.constant 0 : index
    %c0_12 = arith.constant 0 : index
    %14 = vector.load %arg5[%c0_11, %c0_12] : memref<8x896xf32, #tpu.memory_space<vmem>>, vector<8x896xf32>
    tpu.vector_store %arg5[%c0_11, %c0_12], %13 {strides = array<i32>} : memref<8x896xf32, #tpu.memory_space<vmem>>, vector<8x896xf32>,
    return
  }
  func.func @transform_0(%arg0: i32) -> (i32, i32) {
    %c0_i32 = arith.constant 0 : i32
    %c0_i32_0 = arith.constant 0 : i32
    return %arg0, %c0_i32 : i32, i32
  }
  func.func @transform_1(%arg0: i32) -> (i32, i32) {
    %c0_i32 = arith.constant 0 : i32
    %c0_i32_0 = arith.constant 0 : i32
    %c0_i32_1 = arith.constant 0 : i32
    return %c0_i32, %c0_i32_0 : i32, i32
  }
  func.func @transform_2(%arg0: i32) -> (i32, i32) {
    %c0_i32 = arith.constant 0 : i32
    %c0_i32_0 = arith.constant 0 : i32
    %c0_i32_1 = arith.constant 0 : i32
    return %c0_i32, %c0_i32_0 : i32, i32
  }
  func.func @transform_3(%arg0: i32) -> (i32, i32) {
    %c0_i32 = arith.constant 0 : i32
    %c0_i32_0 = arith.constant 0 : i32
    %c0_i32_1 = arith.constant 0 : i32
    return %c0_i32, %c0_i32_0 : i32, i32
  }
  func.func @transform_4(%arg0: i32) -> (i32, i32) {
    %c0_i32 = arith.constant 0 : i32
    %c0_i32_0 = arith.constant 0 : i32
    return %arg0, %c0_i32 : i32, i32
  }
}

</mosaic_0001>

<bundles_post_ra>
// kernel: tpu_custom_call.1
= control target key start
LH: loop header
LB: loop body
LE: loop exit
PB: predicated region body
PF: predicated region fallthrough
CT: control target
= control target key end

     0   :  { %9 = vsyncpa [#allocation3], 0  ;;  %s4282_s0 = inlined_call_operand.hbm [shape: bf16[8,128], index: 0, kind: input, shape index: {}]   ;;  %s4283_s1 = inlined_call_operand.hbm [shape: bf16[128,256], index: 1, kind: input, shape index: {}]   ;;  %s4284_s2 = inlined_call_operand.hbm [shape: bf16[256,512], index: 2, kind: input, shape index: {}]   ;;  %s4285_s3 = inlined_call_operand.hbm [shape: bf16[512,896], index: 3, kind: input, shape index: {}]   ;;  %s4286_s4 = inlined_call_operand.hbm [shape: f32[8,896], index: 4, kind: output, shape index: {}]  }
   0x1   :  { %10 = vsyncpa [#allocation6], 0 }
   0x2   :  { %11 = vsyncpa [#allocation9], 0  ;;  %s28_s17 = sshll.u32 %s4283_s1, 4  ;;  %s29_s17 = int_to_ptr.hbm [resolvable:$true] %s28_s17 }
   0x3   :  { %12 = vsyncpa [#allocation4], 0  ;;  %s4180_s18 = smov [#allocation5]   ;;  %s18_s22 = sshll.u32 %s4282_s0, 4  ;;  %s19_s22 = int_to_ptr.hbm [resolvable:$true] %s18_s22 }
   0x4   :  { %s30_s19 = sshll.u32 %s4180_s18, 4  ;;  %s4181_s23 = smov 128   ;;  %s31_s19 = int_to_ptr.vmem [resolvable:$true] %s30_s19 }
   0x5   :  { %s4182_s24 = smov 8   ;;  %s4183_s25 = smov [#allocation2]  }
   0x6   :  { %36 = dma.hbm_to_vmem [thread:$0]  %s29_s17, 2048, %s31_s19, [#allocation6], %s4181_s23, %s4181_s23, %s4182_s24  }
   0x7   :  { %s20_s26 = sshll.u32 %s4183_s25, 4  ;;  %s41_s29 = sshll.u32 %s4284_s2, 4  ;;  %s21_s26 = int_to_ptr.vmem [resolvable:$true] %s20_s26  ;;  %s42_s29 = int_to_ptr.hbm [resolvable:$true] %s41_s29 }
   0x8   :  { %23 = dma.hbm_to_vmem [thread:$0]  %s19_s22, 64, %s21_s26, [#allocation3]  }
   0x9   :  { %s4184_s1 = smov [#allocation7]   ;;  %s54_s0 = sshll.u32 %s4285_s3, 4  ;;  %s55_s0 = int_to_ptr.hbm [resolvable:$true] %s54_s0 }
   0xa   :  { %s43_s30 = sshll.u32 %s4184_s1, 4  ;;  %s4185_s7 = smov 256   ;;  %s44_s30 = int_to_ptr.vmem [resolvable:$true] %s43_s30 }
   0xb   :  { %s4186_s8 = smov 16   ;;  %s4187_s9 = smov [#allocation8]  }
   0xc   :  { %49 = dma.hbm_to_vmem [thread:$0]  %s42_s29, 8192, %s44_s30, [#allocation6], %s4185_s7, %s4185_s7, %s4186_s8  }
   0xd   :  { %s56_s10 = sshll.u32 %s4187_s9, 4  ;;  %s4188_s11 = smov 448   ;;  %s57_s10 = int_to_ptr.vmem [resolvable:$true] %s56_s10 }
   0xe   :  { %s4189_s12 = smov 28  }
   0xf   :  { %62 = dma.hbm_to_vmem [thread:$0]  %s55_s0, 28672, %s57_s10, [#allocation9], %s4188_s11, %s4188_s11, %s4189_s12  }
  0x10   :  { %4172 = dma.done.wait [#allocation3], 64  }
  0x11   :  { %4173 = vsyncadd [#allocation3], 4294967232 }
  0x12   :  { %4174 = dma.done.wait [#allocation6], 10240  }
  0x13   :  { %4175 = vsyncadd [#allocation6], 4294957056 }
  0x14   :  { %4176 = dma.done.wait [#allocation9], 28672  }
  0x15   :  { %4177 = vsyncadd [#allocation9], 4294938624  ;;  %v2565_v0 = vld [vmem:[#allocation5 + $0x70] sm:$0xf]  ;;  %v3738_v1 = vld [vmem:[#allocation5 + $0x74] sm:$0xf0] }
  0x16   :  { %v3737_v2 = vld [vmem:[#allocation5 + $0x74] sm:$0xf]  ;;  %v2566_v3 = vor.u32 %v3738_v1, %v2565_v0  ;;  %v2567_v4 = vld [vmem:[#allocation5 + $0x78] sm:$0xf0]  ;;  %v2557_v5 = vld [vmem:[#allocation5 + $0x60] sm:$0xf] }
  0x17   :  { %v3736_v6 = vld [vmem:[#allocation5 + $0x64] sm:$0xf0]  ;;  %v2570_v7 = vor.u32 %v3737_v2, %v2567_v4  ;;  %v3735_v8 = vld [vmem:[#allocation5 + $0x64] sm:$0xf]  ;;  %v2559_v9 = vld [vmem:[#allocation5 + $0x68] sm:$0xf0] }
  0x18   :  { %176 = vmatpush.bf16.msra.mxu0 %v2566_v3  ;;  %v2558_v10 = vor.u32 %v3736_v6, %v2557_v5  ;;  %v2562_v11 = vor.u32 %v3735_v8, %v2559_v9  ;;  %v2549_v12 = vld [vmem:[#allocation5 + $0x50] sm:$0xf]  ;;  %v3734_v13 = vld [vmem:[#allocation5 + $0x54] sm:$0xf0]  ;;  %v3733_v14 = vld [vmem:[#allocation5 + $0x54] sm:$0xf] }
  0x19   :  { %189 = vmatpush.bf16.msra.mxu1 %v2570_v7  ;;  %v2551_v15 = vld [vmem:[#allocation5 + $0x58] sm:$0xf0]  ;;  %v2550_v16 = vor.u32 %v3734_v13, %v2549_v12  ;;  %v2541_v18 = vld [vmem:[#allocation5 + $0x40] sm:$0xf]  ;;  %v3732_v19 = vld [vmem:[#allocation5 + $0x44] sm:$0xf0] }
  0x1a   :  { %v2554_v17 = vor.u32 %v3733_v14, %v2551_v15  ;;  %v3731_v20 = vld [vmem:[#allocation5 + $0x44] sm:$0xf]  ;;  %v2543_v21 = vld [vmem:[#allocation5 + $0x48] sm:$0xf0]  ;;  %v2542_v22 = vor.u32 %v3732_v19, %v2541_v18  ;;  %v2685_v23 = vld [vmem:[#allocation7 + $0xe0] sm:$0xf] }
  0x1b   :  { %v3769_v24 = vld [vmem:[#allocation7 + $0xec] sm:$0xf0]  ;;  %v2813_v25 = vld [vmem:[#allocation7 + $0x1e0] sm:$0xf]  ;;  %v2546_v26 = vor.u32 %v3731_v20, %v2543_v21  ;;  %v3730_v28 = vld [vmem:[#allocation5 + $0x34] sm:$0xf0] }
  0x1c   :  { %177 = vmatpush.bf16.msra.mxu0 %v2558_v10  ;;  %v2533_v27 = vld [vmem:[#allocation5 + $0x30] sm:$0xf]  ;;  %v2686_v29 = vor.u32 %v3769_v24, %v2685_v23  ;;  %v3729_v31 = vld [vmem:[#allocation5 + $0x34] sm:$0xf]  ;;  %v2535_v32 = vld [vmem:[#allocation5 + $0x38] sm:$0xf0] }
  0x1d   :  { %190 = vmatpush.bf16.msra.mxu1 %v2562_v11  ;;  %v3801_v30 = vld [vmem:[#allocation7 + $0x1ec] sm:$0xf0]  ;;  %v2669_v34 = vld [vmem:[#allocation7 + $0xc0] sm:$0xf]  ;;  %v2534_v38 = vor.u32 %v3730_v28, %v2533_v27  ;;  %v3728_v40 = vld [vmem:[#allocation5 + $0x24] sm:$0xf0]  ;;  %v2538_v43 = vor.u32 %v3729_v31, %v2535_v32 }
  0x1e   :  { %v2814_v33 = vor.u32 %v3801_v30, %v2813_v25  ;;  %590 = vmatpush.bf16.msra.mxu2 %v2686_v29  ;;  %v3765_v35 = vld [vmem:[#allocation7 + $0xcc] sm:$0xf0]  ;;  %v2797_v36 = vld [vmem:[#allocation7 + $0x1c0] sm:$0xf]  ;;  %v3727_v44 = vld [vmem:[#allocation5 + $0x24] sm:$0xf] }
  0x1f   :  { %v3797_v37 = vld [vmem:[#allocation7 + $0x1cc] sm:$0xf0]  ;;  %v2525_v39 = vld [vmem:[#allocation5 + $0x20] sm:$0xf]  ;;  %v2670_v41 = vor.u32 %v3765_v35, %v2669_v34  ;;  %v2527_v47 = vld [vmem:[#allocation5 + $0x28] sm:$0xf0] }
  0x20   :  { %178 = vmatpush.bf16.msra.mxu0 %v2550_v16  ;;  %603 = vmatpush.bf16.msra.mxu3 %v2814_v33  ;;  %v2798_v42 = vor.u32 %v3797_v37, %v2797_v36  ;;  %v2653_v45 = vld [vmem:[#allocation7 + $0xa0] sm:$0xf]  ;;  %v3761_v46 = vld [vmem:[#allocation7 + $0xac] sm:$0xf0]  ;;  %v2526_v51 = vor.u32 %v3728_v40, %v2525_v39  ;;  %v2530_v56 = vor.u32 %v3727_v44, %v2527_v47  ;;  %v3726_v57 = vld [vmem:[#allocation5 + $0x14] sm:$0xf0] }
  0x21   :  { %191 = vmatpush.bf16.msra.mxu1 %v2554_v17  ;;  %v2781_v48 = vld [vmem:[#allocation7 + $0x1a0] sm:$0xf]  ;;  %v3793_v49 = vld [vmem:[#allocation7 + $0x1ac] sm:$0xf0]  ;;  %v2654_v50 = vor.u32 %v3761_v46, %v2653_v45  ;;  %v3725_v60 = vld [vmem:[#allocation5 + $0x14] sm:$0xf] }
  0x22   :  { %591 = vmatpush.bf16.msra.mxu2 %v2670_v41  ;;  %v2517_v52 = vld [vmem:[#allocation5 + $0x10] sm:$0xf]  ;;  %v2782_v53 = vor.u32 %v3793_v49, %v2781_v48  ;;  %v2637_v54 = vld [vmem:[#allocation7 + $0x80] sm:$0xf]  ;;  %v2519_v61 = vld [vmem:[#allocation5 + $0x18] sm:$0xf0] }
  0x23   :  { %v3757_v55 = vld [vmem:[#allocation7 + $0x8c] sm:$0xf0]  ;;  %v2765_v58 = vld [vmem:[#allocation7 + $0x180] sm:$0xf]  ;;  %v2518_v0 = vor.u32 %v3726_v57, %v2517_v52  ;;  %v3724_v1 = vld [vmem:[#allocation5 + $0x4] sm:$0xf0]  ;;  %v2522_v5 = vor.u32 %v3725_v60, %v2519_v61 }
  0x24   :  { %179 = vmatpush.bf16.msra.mxu0 %v2542_v22  ;;  %604 = vmatpush.bf16.msra.mxu3 %v2798_v42  ;;  %v3789_v59 = vld [vmem:[#allocation7 + $0x18c] sm:$0xf0]  ;;  %v2509_v62 = vld [vmem:[#allocation5] sm:$0xf]  ;;  %v2638_v63 = vor.u32 %v3757_v55, %v2637_v54  ;;  %v3723_v6 = vld [vmem:[#allocation5 + $0x4] sm:$0xf] }
  0x25   :  { %192 = vmatpush.bf16.msra.mxu1 %v2546_v26  ;;  %v2766_v2 = vor.u32 %v3789_v59, %v2765_v58  ;;  %v2621_v3 = vld [vmem:[#allocation7 + $0x60] sm:$0xf]  ;;  %v3753_v4 = vld [vmem:[#allocation7 + $0x6c] sm:$0xf0]  ;;  %v2511_v9 = vld [vmem:[#allocation5 + $0x8] sm:$0xf0]  ;;  %v2510_v15 = vor.u32 %v3724_v1, %v2509_v62 }
  0x26   :  { %592 = vmatpush.bf16.msra.mxu2 %v2654_v50  ;;  %v2749_v7 = vld [vmem:[#allocation7 + $0x160] sm:$0xf]  ;;  %v3785_v8 = vld [vmem:[#allocation7 + $0x16c] sm:$0xf0]  ;;  %v3767_v10 = vld [vmem:[#allocation7 + $0xe4] sm:$0xf]  ;;  %v2622_v14 = vor.u32 %v3753_v4, %v2621_v3  ;;  %v2514_v19 = vor.u32 %v3723_v6, %v2511_v9 }
  0x27   :  { %v2687_v11 = vld [vmem:[#allocation7 + $0xf0] sm:$0xf0]  ;;  %v3799_v12 = vld [vmem:[#allocation7 + $0x1e4] sm:$0xf]  ;;  %v2750_v16 = vor.u32 %v3785_v8, %v2749_v7  ;;  %v2605_v17 = vld [vmem:[#allocation7 + $0x40] sm:$0xf] }
  0x28   :  { %180 = vmatpush.bf16.msra.mxu0 %v2534_v38  ;;  %605 = vmatpush.bf16.msra.mxu3 %v2782_v53  ;;  %v2815_v13 = vld [vmem:[#allocation7 + $0x1f0] sm:$0xf0]  ;;  %v3749_v18 = vld [vmem:[#allocation7 + $0x4c] sm:$0xf0]  ;;  %v2690_v20 = vor.u32 %v3767_v10, %v2687_v11  ;;  %v2733_v21 = vld [vmem:[#allocation7 + $0x140] sm:$0xf] }
  0x29   :  { %193 = vmatpush.bf16.msra.mxu1 %v2538_v43  ;;  %v3781_v22 = vld [vmem:[#allocation7 + $0x14c] sm:$0xf0]  ;;  %v2818_v23 = vor.u32 %v3799_v12, %v2815_v13  ;;  %v3763_v24 = vld [vmem:[#allocation7 + $0xc4] sm:$0xf]  ;;  %v2671_v25 = vld [vmem:[#allocation7 + $0xd0] sm:$0xf0]  ;;  %v2606_v28 = vor.u32 %v3749_v18, %v2605_v17 }
  0x2a   :  { %593 = vmatpush.bf16.msra.mxu2 %v2638_v63  ;;  %v3795_v26 = vld [vmem:[#allocation7 + $0x1c4] sm:$0xf]  ;;  %v2799_v27 = vld [vmem:[#allocation7 + $0x1d0] sm:$0xf0]  ;;  %v79_v29 = vld [vmem:[#allocation2] sm:$0xf]  ;;  %v2734_v30 = vor.u32 %v3781_v22, %v2733_v21  ;;  %v2674_v33 = vor.u32 %v3763_v24, %v2671_v25 }
  0x2b   :  { %v2589_v31 = vld [vmem:[#allocation7 + $0x20] sm:$0xf]  ;;  %v3745_v32 = vld [vmem:[#allocation7 + $0x2c] sm:$0xf0]  ;;  %v2802_v36 = vor.u32 %v3795_v26, %v2799_v27  ;;  %v3759_v37 = vld [vmem:[#allocation7 + $0xa4] sm:$0xf] }
  0x2c   :  { %181 = vmatpush.bf16.msra.mxu0 %v2526_v51  ;;  %606 = vmatpush.bf16.msra.mxu3 %v2766_v2  ;;  %v2717_v34 = vld [vmem:[#allocation7 + $0x120] sm:$0xf]  ;;  %v3777_v35 = vld [vmem:[#allocation7 + $0x12c] sm:$0xf0]  ;;  %v2655_v38 = vld [vmem:[#allocation7 + $0xb0] sm:$0xf0]  ;;  %v2590_v41 = vor.u32 %v3745_v32, %v2589_v31 }
  0x2d   :  { %194 = vmatpush.bf16.msra.mxu1 %v2530_v56  ;;  %v3791_v39 = vld [vmem:[#allocation7 + $0x1a4] sm:$0xf]  ;;  %v2783_v40 = vld [vmem:[#allocation7 + $0x1b0] sm:$0xf0]  ;;  %v2718_v43 = vor.u32 %v3777_v35, %v2717_v34  ;;  %v2573_v44 = vld [vmem:[#allocation7] sm:$0xf]  ;;  %v2658_v47 = vor.u32 %v3759_v37, %v2655_v38 }
  0x2e   :  { %594 = vmatpush.bf16.msra.mxu2 %v2622_v14  ;;  %v3755_v42 = vld [vmem:[#allocation7 + $0x84] sm:$0xf]  ;;  %v3741_v45 = vld [vmem:[#allocation7 + $0xc] sm:$0xf0]  ;;  %v2701_v46 = vld [vmem:[#allocation7 + $0x100] sm:$0xf]  ;;  %v2786_v51 = vor.u32 %v3791_v39, %v2783_v40 }
  0x2f   :  { %v3773_v48 = vld [vmem:[#allocation7 + $0x10c] sm:$0xf0]  ;;  %v2693_v49 = vld [vmem:[#allocation7 + $0xe8] sm:$0xf]  ;;  %v3770_v50 = vld [vmem:[#allocation7 + $0xf4] sm:$0xf0]  ;;  %v2574_v57 = vor.u32 %v3741_v45, %v2573_v44 }
  0x30   :  { %182 = vmatpush.bf16.msra.mxu0 %v2518_v0  ;;  %607 = vmatpush.bf16.msra.mxu3 %v2750_v16  ;;  %v2639_v52 = vld [vmem:[#allocation7 + $0x90] sm:$0xf0]  ;;  %v2821_v53 = vld [vmem:[#allocation7 + $0x1e8] sm:$0xf]  ;;  %v3802_v54 = vld [vmem:[#allocation7 + $0x1f4] sm:$0xf0]  ;;  %v2702_v58 = vor.u32 %v3773_v48, %v2701_v46  ;;  %v2694_v59 = vor.u32 %v3770_v50, %v2693_v49 }
  0x31   :  { %195 = vmatpush.bf16.msra.mxu1 %v2522_v5  ;;  %v3787_v55 = vld [vmem:[#allocation7 + $0x184] sm:$0xf]  ;;  %v2767_v56 = vld [vmem:[#allocation7 + $0x190] sm:$0xf0]  ;;  %v2642_v60 = vor.u32 %v3755_v42, %v2639_v52  ;;  %v2822_v62 = vor.u32 %v3802_v54, %v2821_v53  ;;  %v2677_v63 = vld [vmem:[#allocation7 + $0xc8] sm:$0xf] }
  0x32   :  { %595 = vmatpush.bf16.msra.mxu2 %v2606_v28  ;;  %v3751_v61 = vld [vmem:[#allocation7 + $0x64] sm:$0xf]  ;;  %v3766_v0 = vld [vmem:[#allocation7 + $0xd4] sm:$0xf0]  ;;  %v2770_v1 = vor.u32 %v3787_v55, %v2767_v56  ;;  %v2623_v2 = vld [vmem:[#allocation7 + $0x70] sm:$0xf0] }
  0x33   :  { %v2805_v3 = vld [vmem:[#allocation7 + $0x1c8] sm:$0xf]  ;;  %v3798_v4 = vld [vmem:[#allocation7 + $0x1d4] sm:$0xf0]  ;;  %v3783_v5 = vld [vmem:[#allocation7 + $0x164] sm:$0xf]  ;;  %v2678_v7 = vor.u32 %v3766_v0, %v2677_v63  ;;  %v2626_v8 = vor.u32 %v3751_v61, %v2623_v2 }
  0x34   :  { %183 = vmatpush.bf16.msra.mxu0 %v2510_v15  ;;  %608 = vmatpush.bf16.msra.mxu3 %v2734_v30  ;;  %v2751_v6 = vld [vmem:[#allocation7 + $0x170] sm:$0xf0]  ;;  %v3747_v9 = vld [vmem:[#allocation7 + $0x44] sm:$0xf]  ;;  %v2806_v10 = vor.u32 %v3798_v4, %v2805_v3  ;;  %v2661_v11 = vld [vmem:[#allocation7 + $0xa8] sm:$0xf] }
  0x35   :  { %196 = vmatpush.bf16.msra.mxu1 %v2514_v19  ;;  %v3762_v12 = vld [vmem:[#allocation7 + $0xb4] sm:$0xf0]  ;;  %v2754_v13 = vor.u32 %v3783_v5, %v2751_v6  ;;  %v2607_v14 = vld [vmem:[#allocation7 + $0x50] sm:$0xf0]  ;;  %v2789_v15 = vld [vmem:[#allocation7 + $0x1a8] sm:$0xf] }
  0x36   :  { %596 = vmatpush.bf16.msra.mxu2 %v2590_v41  ;;  %v3794_v16 = vld [vmem:[#allocation7 + $0x1b4] sm:$0xf0]  ;;  %v3779_v17 = vld [vmem:[#allocation7 + $0x144] sm:$0xf]  ;;  %v2735_v18 = vld [vmem:[#allocation7 + $0x150] sm:$0xf0]  ;;  %v2662_v19 = vor.u32 %v3762_v12, %v2661_v11 }
  0x37   :  { %184 = vmatmul.bf16.vlgmr.msra.gmra.mxu0 %v79_v29  ;;  %v2790_v21 = vor.u32 %v3794_v16, %v2789_v15  ;;  %v2738_v22 = vor.u32 %v3779_v17, %v2735_v18  ;;  %v2591_v24 = vld [vmem:[#allocation7 + $0x30] sm:$0xf0]  ;;  %v3775_v25 = vld [vmem:[#allocation7 + $0x124] sm:$0xf]  ;;  %v2695_v34 = vld [vmem:[#allocation7 + $0xf8] sm:$0xf0] }
  0x38   :  { %616 = vmatpush.bf16.msrb.mxu0 %v2690_v20  ;;  %197 = vmatmul.bf16.vlgmr.msra.gmra.mxu1 %v79_v29  ;;  %v2610_v20 = vor.u32 %v3747_v9, %v2607_v14  ;;  %v2719_v26 = vld [vmem:[#allocation7 + $0x130] sm:$0xf0]  ;;  %v3739_v29 = vld [vmem:[#allocation7 + $0x4] sm:$0xf]  ;;  %v3800_v35 = vld [vmem:[#allocation7 + $0x1ec] sm:$0xf] }
  0x39   :  { %629 = vmatpush.bf16.msrb.mxu1 %v2818_v23  ;;  %609 = vmatpush.bf16.msra.mxu3 %v2718_v43  ;;  %v3743_v23 = vld [vmem:[#allocation7 + $0x24] sm:$0xf]  ;;  %v2722_v28 = vor.u32 %v3775_v25, %v2719_v26  ;;  %v2575_v30 = vld [vmem:[#allocation7 + $0x10] sm:$0xf0]  ;;  %v3764_v41 = vld [vmem:[#allocation7 + $0xcc] sm:$0xf] }
  0x3a   :  { %597 = vmatpush.bf16.msra.mxu2 %v2574_v57  ;;  %v2594_v27 = vor.u32 %v3743_v23, %v2591_v24  ;;  %v3771_v31 = vld [vmem:[#allocation7 + $0x104] sm:$0xf]  ;;  %v2703_v32 = vld [vmem:[#allocation7 + $0x110] sm:$0xf0]  ;;  %v2578_v37 = vor.u32 %v3739_v29, %v2575_v30  ;;  %v2679_v42 = vld [vmem:[#allocation7 + $0xd8] sm:$0xf0] }
  0x3b   :  { %v2706_v38 = vor.u32 %v3771_v31, %v2703_v32  ;;  %v3796_v43 = vld [vmem:[#allocation7 + $0x1cc] sm:$0xf]  ;;  %v2807_v44 = vld [vmem:[#allocation7 + $0x1d8] sm:$0xf0]  ;;  %v2682_v45 = vor.u32 %v3764_v41, %v2679_v42  ;;  %v2645_v53 = vld [vmem:[#allocation7 + $0x88] sm:$0xf] }
  0x3c   :  { %617 = vmatpush.bf16.msrb.mxu0 %v2674_v33  ;;  %v3768_v33 = vld [vmem:[#allocation7 + $0xec] sm:$0xf]  ;;  %v2810_v46 = vor.u32 %v3796_v43, %v2807_v44  ;;  %v2663_v48 = vld [vmem:[#allocation7 + $0xb8] sm:$0xf0]  ;;  %v3758_v54 = vld [vmem:[#allocation7 + $0x94] sm:$0xf0] }
  0x3d   :  { %630 = vmatpush.bf16.msrb.mxu1 %v2802_v36  ;;  %610 = vmatpush.bf16.msra.mxu3 %v2702_v58  ;;  %v2823_v36 = vld [vmem:[#allocation7 + $0x1f8] sm:$0xf0]  ;;  %v2698_v39 = vor.u32 %v3768_v33, %v2695_v34  ;;  %v3792_v49 = vld [vmem:[#allocation7 + $0x1ac] sm:$0xf]  ;;  %v2773_v55 = vld [vmem:[#allocation7 + $0x188] sm:$0xf]  ;;  %v2646_v56 = vor.u32 %v3758_v54, %v2645_v53 }
  0x3e   :  { %642 = vmatpush.bf16.msrb.mxu2 %v2694_v59  ;;  %v2826_v40 = vor.u32 %v3800_v35, %v2823_v36  ;;  %v2791_v50 = vld [vmem:[#allocation7 + $0x1b8] sm:$0xf0]  ;;  %v3790_v57 = vld [vmem:[#allocation7 + $0x194] sm:$0xf0]  ;;  %v3756_v58 = vld [vmem:[#allocation7 + $0x8c] sm:$0xf] }
  0x3f   :  { %v2794_v52 = vor.u32 %v3792_v49, %v2791_v50  ;;  %v2647_v59 = vld [vmem:[#allocation7 + $0x98] sm:$0xf0]  ;;  %v3754_v2 = vld [vmem:[#allocation7 + $0x74] sm:$0xf0]  ;;  %v2757_v3 = vld [vmem:[#allocation7 + $0x168] sm:$0xf] }
  0x40   :  { %618 = vmatpush.bf16.msrb.mxu0 %v2658_v47  ;;  %v3760_v47 = vld [vmem:[#allocation7 + $0xac] sm:$0xf]  ;;  %v2650_v61 = vor.u32 %v3756_v58, %v2647_v59  ;;  %v2775_v63 = vld [vmem:[#allocation7 + $0x198] sm:$0xf0]  ;;  %v3786_v5 = vld [vmem:[#allocation7 + $0x174] sm:$0xf0] }
  0x41   :  { %631 = vmatpush.bf16.msrb.mxu1 %v2786_v51  ;;  %655 = vmatpush.bf16.msrb.mxu3 %v2822_v62  ;;  %v2666_v51 = vor.u32 %v3760_v47, %v2663_v48  ;;  %v3788_v62 = vld [vmem:[#allocation7 + $0x18c] sm:$0xf]  ;;  %v2759_v11 = vld [vmem:[#allocation7 + $0x178] sm:$0xf0]  ;;  %v3750_v14 = vld [vmem:[#allocation7 + $0x54] sm:$0xf0] }
  0x42   :  { %643 = vmatpush.bf16.msrb.mxu2 %v2678_v7  ;;  %v2778_v0 = vor.u32 %v3788_v62, %v2775_v63  ;;  %v3752_v6 = vld [vmem:[#allocation7 + $0x6c] sm:$0xf]  ;;  %v2631_v7 = vld [vmem:[#allocation7 + $0x78] sm:$0xf0]  ;;  %v2741_v15 = vld [vmem:[#allocation7 + $0x148] sm:$0xf] }
  0x43   :  { %v2634_v9 = vor.u32 %v3752_v6, %v2631_v7  ;;  %v3782_v17 = vld [vmem:[#allocation7 + $0x154] sm:$0xf0]  ;;  %v3748_v18 = vld [vmem:[#allocation7 + $0x4c] sm:$0xf]  ;;  %v2743_v23 = vld [vmem:[#allocation7 + $0x158] sm:$0xf0] }
  0x44   :  { %619 = vmatpush.bf16.msrb.mxu0 %v2642_v60  ;;  %v2774_v60 = vor.u32 %v3790_v57, %v2773_v55  ;;  %v2597_v24 = vld [vmem:[#allocation7 + $0x28] sm:$0xf]  ;;  %v3746_v26 = vld [vmem:[#allocation7 + $0x34] sm:$0xf0]  ;;  %v3744_v31 = vld [vmem:[#allocation7 + $0x2c] sm:$0xf] }
  0x45   :  { %632 = vmatpush.bf16.msrb.mxu1 %v2770_v1  ;;  %656 = vmatpush.bf16.msrb.mxu3 %v2806_v10  ;;  %v2629_v1 = vld [vmem:[#allocation7 + $0x68] sm:$0xf]  ;;  %v3784_v10 = vld [vmem:[#allocation7 + $0x16c] sm:$0xf]  ;;  %v2598_v29 = vor.u32 %v3746_v26, %v2597_v24  ;;  %v2599_v32 = vld [vmem:[#allocation7 + $0x38] sm:$0xf0] }
  0x46   :  { %644 = vmatpush.bf16.msrb.mxu2 %v2662_v19  ;;  %v2630_v4 = vor.u32 %v3754_v2, %v2629_v1  ;;  %v2762_v12 = vor.u32 %v3784_v10, %v2759_v11  ;;  %v2615_v19 = vld [vmem:[#allocation7 + $0x58] sm:$0xf0]  ;;  %v3776_v33 = vld [vmem:[#allocation7 + $0x12c] sm:$0xf]  ;;  %v2602_v34 = vor.u32 %v3744_v31, %v2599_v32  ;;  %v2581_v36 = vld [vmem:[#allocation7 + $0x8] sm:$0xf] }
  0x47   :  { %v2727_v35 = vld [vmem:[#allocation7 + $0x138] sm:$0xf0]  ;;  %v3740_v41 = vld [vmem:[#allocation7 + $0xc] sm:$0xf]  ;;  %v3249_v49 = vld [vmem:[#allocation8 + $0x348] sm:$0xf] }
  0x48   :  { %620 = vmatpush.bf16.msrb.mxu0 %v2626_v8  ;;  %v2758_v8 = vor.u32 %v3786_v5, %v2757_v3  ;;  %v2583_v43 = vld [vmem:[#allocation7 + $0x18] sm:$0xf0]  ;;  %v3772_v44 = vld [vmem:[#allocation7 + $0x10c] sm:$0xf]  ;;  %v3911_v50 = vld [vmem:[#allocation8 + $0x360] sm:$0xf0] }
  0x49   :  { %633 = vmatpush.bf16.msrb.mxu1 %v2754_v13  ;;  %657 = vmatpush.bf16.msrb.mxu3 %v2790_v21  ;;  %v2613_v13 = vld [vmem:[#allocation7 + $0x48] sm:$0xf]  ;;  %v2618_v21 = vor.u32 %v3748_v18, %v2615_v19  ;;  %v2586_v47 = vor.u32 %v3740_v41, %v2583_v43  ;;  %v3855_v53 = vld [vmem:[#allocation8 + $0x1a0] sm:$0xf0]  ;;  %v3250_v62 = vor.u32 %v3911_v50, %v3249_v49  ;;  %v3221_v63 = vld [vmem:[#allocation8 + $0x310] sm:$0xf] }
  0x4a   :  { %645 = vmatpush.bf16.msrb.mxu2 %v2646_v56  ;;  %v2614_v16 = vor.u32 %v3750_v14, %v2613_v13  ;;  %v3697_v54 = vld [vmem:[#allocation8 + $0x6c8] sm:$0xf]  ;;  %v4023_v55 = vld [vmem:[#allocation8 + $0x6e0] sm:$0xf0]  ;;  %v2997_v3 = vld [vmem:[#allocation8 + $0x150] sm:$0xf] }
  0x4b   :  { %v3473_v58 = vld [vmem:[#allocation8 + $0x508] sm:$0xf]  ;;  %v3967_v59 = vld [vmem:[#allocation8 + $0x520] sm:$0xf0]  ;;  %v3698_v5 = vor.u32 %v4023_v55, %v3697_v54  ;;  %v3669_v6 = vld [vmem:[#allocation8 + $0x690] sm:$0xf] }
  0x4c   :  { %621 = vmatpush.bf16.msrb.mxu0 %v2610_v20  ;;  %v2742_v20 = vor.u32 %v3782_v17, %v2741_v15  ;;  %v3474_v7 = vor.u32 %v3967_v59, %v3473_v58  ;;  %v3960_v10 = vld [vmem:[#allocation8 + $0x4e8] sm:$0xf0]  ;;  %v3897_v13 = vld [vmem:[#allocation8 + $0x2f0] sm:$0xf0]  ;;  %v3641_v19 = vld [vmem:[#allocation8 + $0x658] sm:$0xf] }
  0x4d   :  { %634 = vmatpush.bf16.msrb.mxu1 %v2738_v22  ;;  %658 = vmatpush.bf16.msrb.mxu3 %v2774_v60  ;;  %v3780_v22 = vld [vmem:[#allocation7 + $0x14c] sm:$0xf]  ;;  %v3841_v17 = vld [vmem:[#allocation8 + $0x130] sm:$0xf0]  ;;  %v3165_v26 = vld [vmem:[#allocation8 + $0x2a0] sm:$0xf] }
  0x4e   :  { %646 = vmatpush.bf16.msrb.mxu2 %v2630_v4  ;;  %v2746_v25 = vor.u32 %v3780_v22, %v2743_v23  ;;  %v3848_v4 = vld [vmem:[#allocation8 + $0x168] sm:$0xf0]  ;;  %v4009_v22 = vld [vmem:[#allocation8 + $0x670] sm:$0xf0]  ;;  %v3417_v23 = vld [vmem:[#allocation8 + $0x498] sm:$0xf] }
  0x4f   :  { %v2998_v14 = vor.u32 %v3848_v4, %v2997_v3  ;;  %v3953_v24 = vld [vmem:[#allocation8 + $0x4b0] sm:$0xf0]  ;;  %v3642_v31 = vor.u32 %v4009_v22, %v3641_v19  ;;  %v3613_v32 = vld [vmem:[#allocation8 + $0x620] sm:$0xf]  ;;  %v2913_v41 = vld [vmem:[#allocation8 + $0xa8] sm:$0xf] }
  0x50   :  { %622 = vmatpush.bf16.msrb.mxu0 %v2594_v27  ;;  %v2725_v27 = vld [vmem:[#allocation7 + $0x128] sm:$0xf]  ;;  %v3109_v50 = vld [vmem:[#allocation8 + $0x230] sm:$0xf]  ;;  %v3820_v54 = vld [vmem:[#allocation8 + $0x88] sm:$0xf0] }
  0x51   :  { %635 = vmatpush.bf16.msrb.mxu1 %v2722_v28  ;;  %659 = vmatpush.bf16.msrb.mxu3 %v2758_v8  ;;  %v3778_v28 = vld [vmem:[#allocation7 + $0x134] sm:$0xf0]  ;;  %v4016_v8 = vld [vmem:[#allocation8 + $0x6a8] sm:$0xf0]  ;;  %v3333_v59 = vld [vmem:[#allocation8 + $0x3f0] sm:$0xf] }
  0x52   :  { %647 = vmatpush.bf16.msrb.mxu2 %v2614_v16  ;;  %v2726_v30 = vor.u32 %v3778_v28, %v2725_v27  ;;  %v2969_v16 = vld [vmem:[#allocation8 + $0x118] sm:$0xf]  ;;  %v3670_v18 = vor.u32 %v4016_v8, %v3669_v6  ;;  %v3890_v27 = vld [vmem:[#allocation8 + $0x2b8] sm:$0xf0]  ;;  %v3988_v58 = vld [vmem:[#allocation8 + $0x5c8] sm:$0xf0] }
  0x53   :  { %v2970_v28 = vor.u32 %v3841_v17, %v2969_v16  ;;  %v2857_v3 = vld [vmem:[#allocation8 + $0x38] sm:$0xf]  ;;  %v3813_v4 = vld [vmem:[#allocation8 + $0x50] sm:$0xf0]  ;;  %v3806_v16 = vld [vmem:[#allocation8 + $0x18] sm:$0xf0] }
  0x54   :  { %623 = vmatpush.bf16.msrb.mxu0 %v2578_v37  ;;  %v3742_v37 = vld [vmem:[#allocation7 + $0x14] sm:$0xf0]  ;;  %v3852_v19 = vld [vmem:[#allocation8 + $0x18c] sm:$0xf]  ;;  %v3974_v22 = vld [vmem:[#allocation8 + $0x558] sm:$0xf0] }
  0x55   :  { %636 = vmatpush.bf16.msrb.mxu1 %v2706_v38  ;;  %660 = vmatpush.bf16.msrb.mxu3 %v2742_v20  ;;  %v2730_v38 = vor.u32 %v3776_v33, %v2727_v35  ;;  %v2582_v42 = vor.u32 %v3742_v37, %v2581_v36  ;;  %v3418_v33 = vor.u32 %v3953_v24, %v3417_v23  ;;  %v3389_v35 = vld [vmem:[#allocation8 + $0x460] sm:$0xf]  ;;  %v3946_v36 = vld [vmem:[#allocation8 + $0x478] sm:$0xf0]  ;;  %v3529_v6 = vld [vmem:[#allocation8 + $0x578] sm:$0xf] }
  0x56   :  { %648 = vmatpush.bf16.msrb.mxu2 %v2598_v29  ;;  %v2941_v29 = vld [vmem:[#allocation8 + $0xe0] sm:$0xf]  ;;  %v3166_v37 = vor.u32 %v3890_v27, %v3165_v26  ;;  %v3305_v8 = vld [vmem:[#allocation8 + $0x3b8] sm:$0xf]  ;;  %v3918_v24 = vld [vmem:[#allocation8 + $0x398] sm:$0xf0] }
  0x57   :  { %v3277_v23 = vld [vmem:[#allocation8 + $0x380] sm:$0xf]  ;;  %v4020_v27 = vld [vmem:[#allocation8 + $0x6cc] sm:$0xf]  ;;  %s4190_s2 = smov [#allocation10]   ;;  %s2495_s15 = sshll.u32 %s4286_s4, 4  ;;  %s2496_s15 = int_to_ptr.hbm [resolvable:$true] %s2495_s15 }
  0x58   :  { %668 = vmatpush.bf16.msra.mxu0 %v2698_v39  ;;  %v2709_v39 = vld [vmem:[#allocation7 + $0x108] sm:$0xf]  ;;  %s2493_s3 = sshll.u32 %s4190_s2, 4  ;;  %s2494_s3 = int_to_ptr.vmem [resolvable:$true] %s2493_s3 }
  0x59   :  { %681 = vmatpush.bf16.msra.mxu1 %v2826_v40  ;;  %v3774_v40 = vld [vmem:[#allocation7 + $0x114] sm:$0xf0]  ;;  %661 = vmatpush.bf16.msrb.mxu3 %v2726_v30  ;;  %v3834_v30 = vld [vmem:[#allocation8 + $0xf8] sm:$0xf0] }
  0x5a   :  { %649 = vmatpush.bf16.msrb.mxu2 %v2582_v42  ;;  %v3827_v42 = vld [vmem:[#allocation8 + $0xc0] sm:$0xf0] }
  0x5c   :  { %669 = vmatpush.bf16.msra.mxu0 %v2682_v45  ;;  %v2711_v45 = vld [vmem:[#allocation7 + $0x118] sm:$0xf0] }
  0x5d   :  { %682 = vmatpush.bf16.msra.mxu1 %v2810_v46  ;;  %v2710_v46 = vor.u32 %v3774_v40, %v2709_v39  ;;  %v2714_v48 = vor.u32 %v3772_v44, %v2711_v45  ;;  %v3883_v39 = vld [vmem:[#allocation8 + $0x280] sm:$0xf0]  ;;  %v2942_v40 = vor.u32 %v3834_v30, %v2941_v29  ;;  %v3585_v44 = vld [vmem:[#allocation8 + $0x5e8] sm:$0xf]  ;;  %v3390_v45 = vor.u32 %v3946_v36, %v3389_v35  ;;  %v3901_v30 = vld [vmem:[#allocation8 + $0x314] sm:$0xf] }
  0x5e   :  { %v3278_v36 = vor.u32 %v3918_v24, %v3277_v23  ;;  %v3950_v23 = vld [vmem:[#allocation8 + $0x49c] sm:$0xf] }
  0x5f   :  { %662 = vmatpush.bf16.msrb.mxu3 %v2710_v46  ;;  %v3995_v46 = vld [vmem:[#allocation8 + $0x600] sm:$0xf0] }
  0x60   :  { %670 = vmatpush.bf16.msra.mxu0 %v2666_v51  ;;  %v3025_v51 = vld [vmem:[#allocation8 + $0x188] sm:$0xf]  ;;  %v3586_v55 = vor.u32 %v3995_v46, %v3585_v44  ;;  %v3838_v44 = vld [vmem:[#allocation8 + $0x11c] sm:$0xf] }
  0x61   :  { %683 = vmatpush.bf16.msra.mxu1 %v2794_v52  ;;  %v3026_v1 = vor.u32 %v3855_v53, %v3025_v51  ;;  %v3876_v51 = vld [vmem:[#allocation8 + $0x248] sm:$0xf0]  ;;  %v2885_v53 = vld [vmem:[#allocation8 + $0x70] sm:$0xf] }
  0x64   :  { %671 = vmatpush.bf16.msra.mxu0 %v2650_v61 }
  0x65   :  { %684 = vmatpush.bf16.msra.mxu1 %v2778_v0  ;;  %v3904_v0 = vld [vmem:[#allocation8 + $0x328] sm:$0xf0] }
  0x66   :  { %v3222_v11 = vor.u32 %v3904_v0, %v3221_v63  ;;  %v3081_v63 = vld [vmem:[#allocation8 + $0x1f8] sm:$0xf]  ;;  %v3869_v0 = vld [vmem:[#allocation8 + $0x210] sm:$0xf0] }
  0x68   :  { %672 = vmatpush.bf16.msra.mxu0 %v2634_v9  ;;  %v3445_v9 = vld [vmem:[#allocation8 + $0x4d0] sm:$0xf] }
  0x69   :  { %685 = vmatpush.bf16.msra.mxu1 %v2762_v12  ;;  %v3193_v12 = vld [vmem:[#allocation8 + $0x2d8] sm:$0xf]  ;;  %v3446_v20 = vor.u32 %v3960_v10, %v3445_v9  ;;  %v3925_v9 = vld [vmem:[#allocation8 + $0x3d0] sm:$0xf0]  ;;  %v3082_v10 = vor.u32 %v3869_v0, %v3081_v63  ;;  %v2915_v63 = vld [vmem:[#allocation8 + $0xc4] sm:$0xf0] }
  0x6a   :  { %v3964_v0 = vld [vmem:[#allocation8 + $0x50c] sm:$0xf] }
  0x6c   :  { %673 = vmatpush.bf16.msra.mxu0 %v2618_v21 }
  0x6d   :  { %686 = vmatpush.bf16.msra.mxu1 %v2746_v25  ;;  %v3194_v25 = vor.u32 %v3897_v13, %v3193_v12  ;;  %v3908_v12 = vld [vmem:[#allocation8 + $0x34c] sm:$0xf]  ;;  %v2858_v13 = vor.u32 %v3813_v4, %v2857_v3  ;;  %v3475_v3 = vld [vmem:[#allocation8 + $0x524] sm:$0xf0] }
  0x6e   :  { %v3478_v4 = vor.u32 %v3964_v0, %v3475_v3 }
  0x70   :  { %674 = vmatpush.bf16.msra.mxu0 %v2602_v34  ;;  %v4002_v34 = vld [vmem:[#allocation8 + $0x638] sm:$0xf0] }
  0x71   :  { %687 = vmatpush.bf16.msra.mxu1 %v2730_v38  ;;  %v3137_v38 = vld [vmem:[#allocation8 + $0x268] sm:$0xf]  ;;  %v3614_v43 = vor.u32 %v4002_v34, %v3613_v32  ;;  %v3223_v32 = vld [vmem:[#allocation8 + $0x32c] sm:$0xf0] }
  0x72   :  { %v3138_v49 = vor.u32 %v3883_v39, %v3137_v38  ;;  %v2999_v34 = vld [vmem:[#allocation8 + $0x16c] sm:$0xf0]  ;;  %v4013_v38 = vld [vmem:[#allocation8 + $0x694] sm:$0xf] }
  0x73   :  { %v3671_v39 = vld [vmem:[#allocation8 + $0x6ac] sm:$0xf0] }
  0x74   :  { %675 = vmatpush.bf16.msra.mxu0 %v2586_v47  ;;  %v3361_v47 = vld [vmem:[#allocation8 + $0x428] sm:$0xf]  ;;  %v3674_v46 = vor.u32 %v4013_v38, %v3671_v39  ;;  %v3936_v39 = vld [vmem:[#allocation8 + $0x42c] sm:$0xf] }
  0x75   :  { %688 = vmatpush.bf16.msra.mxu1 %v2714_v48  ;;  %v3939_v48 = vld [vmem:[#allocation8 + $0x440] sm:$0xf0] }
  0xb4   :  { %v185_v52 = vpop.f32.mrf.mxu0 }
  0xb5   :  { %v202_v56 = vmax.f32 %v185_v52, 0.0  ;;  %v198_v57 = vpop.f32.mrf.mxu1  ;;  %v2914_v52 = vor.u32 %v3827_v42, %v2913_v41  ;;  %v3894_v41 = vld [vmem:[#allocation8 + $0x2dc] sm:$0xf] }
  0xb6   :  { %v203_v60 = vmax.f32 %v198_v57, 0.0  ;;  %v3362_v57 = vor.u32 %v3939_v48, %v3361_v47  ;;  %v3887_v48 = vld [vmem:[#allocation8 + $0x2a4] sm:$0xf] }
  0xb7   :  { %v4228_v61 = vpack.c.bf16 %v202_v56, %v202_v56  ;;  %v3557_v56 = vld [vmem:[#allocation8 + $0x5b0] sm:$0xf] }
  0xb8   :  { %v4230_v2 = vpack.c.bf16 %v203_v60, %v203_v60  ;;  %v3932_v60 = vld [vmem:[#allocation8 + $0x408] sm:$0xf0] }
  0xb9   :  { %598 = vmatmul.bf16.vlgmr.msra.gmra.mxu2 %v4228_v61  ;;  %624 = vmatmul.bf16.vlgmr.msrb.gmra.mxu0 %v4228_v61 }
  0xba   :  { %611 = vmatmul.bf16.vlgmr.msra.gmra.mxu3 %v4230_v2  ;;  %637 = vmatmul.bf16.vlgmr.msrb.gmra.mxu1 %v4230_v2 }
  0xbb   :  { %2123 = vmatpush.bf16.msra.mxu3 %v3250_v62  ;;  %2110 = vmatpush.bf16.msra.mxu2 %v3026_v1  ;;  %v3110_v62 = vor.u32 %v3876_v51, %v3109_v50  ;;  %v2886_v1 = vor.u32 %v3820_v54, %v2885_v53  ;;  %v3167_v50 = vld [vmem:[#allocation8 + $0x2bc] sm:$0xf0]  ;;  %v3831_v51 = vld [vmem:[#allocation8 + $0xe4] sm:$0xf] }
  0xbc   :  { %v187_v15 = vpop.f32.mrf.mxu0  ;;  %2149 = vmatpush.bf16.msrb.mxu1 %v3698_v5  ;;  %2136 = vmatpush.bf16.msrb.mxu0 %v3474_v7  ;;  %v3558_v5 = vor.u32 %v3988_v58, %v3557_v56  ;;  %v3981_v7 = vld [vmem:[#allocation8 + $0x590] sm:$0xf0]  ;;  %v3170_v53 = vor.u32 %v3887_v48, %v3167_v50  ;;  %v3139_v56 = vld [vmem:[#allocation8 + $0x284] sm:$0xf0]  ;;  %v3971_v48 = vld [vmem:[#allocation8 + $0x544] sm:$0xf] }
  0xbd   :  { %v200_v21 = vpop.f32.mrf.mxu1  ;;  %v2829_v15 = vld [vmem:[#allocation8] sm:$0xf]  ;;  %v3530_v17 = vor.u32 %v3981_v7, %v3529_v6  ;;  %v3873_v58 = vld [vmem:[#allocation8 + $0x234] sm:$0xf]  ;;  %v3083_v6 = vld [vmem:[#allocation8 + $0x214] sm:$0xf0] }
  0xbe   :  { %v3501_v21 = vld [vmem:[#allocation8 + $0x540] sm:$0xf]  ;;  %v2830_v26 = vor.u32 %v3806_v16, %v2829_v15  ;;  %v3859_v15 = vld [vmem:[#allocation8 + $0x1c4] sm:$0xf] }
  0xbf   :  { %2124 = vmatpush.bf16.msra.mxu3 %v3222_v11  ;;  %2111 = vmatpush.bf16.msra.mxu2 %v2998_v14  ;;  %v3862_v11 = vld [vmem:[#allocation8 + $0x1d8] sm:$0xf0]  ;;  %v3251_v14 = vld [vmem:[#allocation8 + $0x364] sm:$0xf0]  ;;  %v3502_v35 = vor.u32 %v3974_v22, %v3501_v21  ;;  %v3055_v16 = vld [vmem:[#allocation8 + $0x1dc] sm:$0xf0] }
  0xc0   :  { %2150 = vmatpush.bf16.msrb.mxu1 %v3670_v18  ;;  %2137 = vmatpush.bf16.msrb.mxu0 %v3446_v20  ;;  %v3306_v18 = vor.u32 %v3925_v9, %v3305_v8  ;;  %v3027_v20 = vld [vmem:[#allocation8 + $0x1a4] sm:$0xf0]  ;;  %v3254_v29 = vor.u32 %v3908_v12, %v3251_v14  ;;  %v3643_v8 = vld [vmem:[#allocation8 + $0x674] sm:$0xf0]  ;;  %v3810_v21 = vld [vmem:[#allocation8 + $0x3c] sm:$0xf] }
  0xc1   :  { %v2859_v22 = vld [vmem:[#allocation8 + $0x54] sm:$0xf0] }
  0xc2   :  { %v2862_v24 = vor.u32 %v3810_v21, %v2859_v22  ;;  %v3891_v21 = vld [vmem:[#allocation8 + $0x2c0] sm:$0xf0] }
  0xc3   :  { %2125 = vmatpush.bf16.msra.mxu3 %v3194_v25  ;;  %2112 = vmatpush.bf16.msra.mxu2 %v2970_v28  ;;  %v3699_v28 = vld [vmem:[#allocation8 + $0x6e4] sm:$0xf0] }
  0xc4   :  { %2151 = vmatpush.bf16.msrb.mxu1 %v3642_v31  ;;  %2138 = vmatpush.bf16.msrb.mxu0 %v3418_v33  ;;  %v3030_v31 = vor.u32 %v3852_v19, %v3027_v20  ;;  %v3845_v33 = vld [vmem:[#allocation8 + $0x154] sm:$0xf]  ;;  %v3615_v19 = vld [vmem:[#allocation8 + $0x63c] sm:$0xf0] }
  0xc5   :  { %v3002_v42 = vor.u32 %v3845_v33, %v2999_v34  ;;  %v3391_v34 = vld [vmem:[#allocation8 + $0x47c] sm:$0xf0] }
  0xc7   :  { %2126 = vmatpush.bf16.msra.mxu3 %v3166_v37  ;;  %2113 = vmatpush.bf16.msra.mxu2 %v2942_v40  ;;  %v3702_v37 = vor.u32 %v4020_v27, %v3699_v28  ;;  %v3226_v40 = vor.u32 %v3901_v30, %v3223_v32  ;;  %v3992_v27 = vld [vmem:[#allocation8 + $0x5ec] sm:$0xf]  ;;  %v3587_v28 = vld [vmem:[#allocation8 + $0x604] sm:$0xf0]  ;;  %v3803_v30 = vld [vmem:[#allocation8 + $0x4] sm:$0xf] }
  0xc8   :  { %2152 = vmatpush.bf16.msrb.mxu1 %v3614_v43  ;;  %2139 = vmatpush.bf16.msrb.mxu0 %v3390_v45  ;;  %v3195_v43 = vld [vmem:[#allocation8 + $0x2f4] sm:$0xf0]  ;;  %v3943_v32 = vld [vmem:[#allocation8 + $0x464] sm:$0xf] }
  0xc9   :  { %650 = vmatmul.bf16.vlgmr.msrb.gmra.mxu2 %v4228_v61  ;;  %676 = vmatmul.bf16.vlgmr.msra.gmra.mxu0 %v4228_v61  ;;  %v3334_v61 = vor.u32 %v3932_v60, %v3333_v59  ;;  %v2971_v45 = vld [vmem:[#allocation8 + $0x134] sm:$0xf0]  ;;  %v3198_v47 = vor.u32 %v3894_v41, %v3195_v43  ;;  %v3111_v59 = vld [vmem:[#allocation8 + $0x24c] sm:$0xf0] }
  0xca   :  { %663 = vmatmul.bf16.vlgmr.msrb.gmra.mxu3 %v4230_v2  ;;  %689 = vmatmul.bf16.vlgmr.msra.gmra.mxu1 %v4230_v2  ;;  %v3053_v2 = vld [vmem:[#allocation8 + $0x1c0] sm:$0xf]  ;;  %v3114_v60 = vor.u32 %v3873_v58, %v3111_v59  ;;  %v3531_v43 = vld [vmem:[#allocation8 + $0x594] sm:$0xf0] }
  0xcb   :  { %2127 = vmatpush.bf16.msra.mxu3 %v3138_v49  ;;  %2114 = vmatpush.bf16.msra.mxu2 %v2914_v52  ;;  %v3054_v25 = vor.u32 %v3862_v11, %v3053_v2  ;;  %v2974_v49 = vor.u32 %v3838_v44, %v2971_v45  ;;  %v2943_v52 = vld [vmem:[#allocation8 + $0xfc] sm:$0xf0]  ;;  %v2887_v2 = vld [vmem:[#allocation8 + $0x8c] sm:$0xf0]  ;;  %v3957_v11 = vld [vmem:[#allocation8 + $0x4d4] sm:$0xf] }
  0xcc   :  { %2153 = vmatpush.bf16.msrb.mxu1 %v3586_v55  ;;  %2140 = vmatpush.bf16.msrb.mxu0 %v3362_v57  ;;  %v2946_v54 = vor.u32 %v3831_v51, %v2943_v52  ;;  %v3880_v55 = vld [vmem:[#allocation8 + $0x26c] sm:$0xf]  ;;  %v3929_v45 = vld [vmem:[#allocation8 + $0x3f4] sm:$0xf]  ;;  %v3922_v51 = vld [vmem:[#allocation8 + $0x3bc] sm:$0xf] }
  0xcd   :  { %v3142_v57 = vor.u32 %v3880_v55, %v3139_v56  ;;  %v3307_v52 = vld [vmem:[#allocation8 + $0x3d4] sm:$0xf0]  ;;  %v3279_v55 = vld [vmem:[#allocation8 + $0x39c] sm:$0xf0] }
  0xcf   :  { %2128 = vmatpush.bf16.msra.mxu3 %v3110_v62  ;;  %2115 = vmatpush.bf16.msra.mxu2 %v2886_v1  ;;  %v3824_v62 = vld [vmem:[#allocation8 + $0xac] sm:$0xf] }
  0xd0   :  { %2154 = vmatpush.bf16.msrb.mxu1 %v3558_v5  ;;  %2141 = vmatpush.bf16.msrb.mxu0 %v3334_v61  ;;  %v2918_v1 = vor.u32 %v3824_v62, %v2915_v63  ;;  %v3866_v5 = vld [vmem:[#allocation8 + $0x1fc] sm:$0xf]  ;;  %v3912_v62 = vld [vmem:[#allocation8 + $0x368] sm:$0xf0] }
  0xd1   :  { %v4006_v61 = vld [vmem:[#allocation8 + $0x65c] sm:$0xf]  ;;  %v3086_v7 = vor.u32 %v3866_v5, %v3083_v6  ;;  %v3905_v5 = vld [vmem:[#allocation8 + $0x330] sm:$0xf0] }
  0xd2   :  { %v3646_v9 = vor.u32 %v4006_v61, %v3643_v8  ;;  %v3033_v8 = vld [vmem:[#allocation8 + $0x190] sm:$0xf] }
  0xd3   :  { %2129 = vmatpush.bf16.msra.mxu3 %v3082_v10  ;;  %2116 = vmatpush.bf16.msra.mxu2 %v2858_v13  ;;  %v3817_v10 = vld [vmem:[#allocation8 + $0x74] sm:$0xf]  ;;  %v3447_v13 = vld [vmem:[#allocation8 + $0x4ec] sm:$0xf0] }
  0xd4   :  { %2155 = vmatpush.bf16.msrb.mxu1 %v3530_v17  ;;  %2142 = vmatpush.bf16.msrb.mxu0 %v3306_v18  ;;  %v2890_v12 = vor.u32 %v3817_v10, %v2887_v2  ;;  %v3450_v14 = vor.u32 %v3957_v11, %v3447_v13  ;;  %v3999_v17 = vld [vmem:[#allocation8 + $0x624] sm:$0xf]  ;;  %v3058_v18 = vor.u32 %v3859_v15, %v3055_v16  ;;  %v3898_v13 = vld [vmem:[#allocation8 + $0x2f8] sm:$0xf0]  ;;  %v3005_v16 = vld [vmem:[#allocation8 + $0x158] sm:$0xf] }
  0xd5   :  { %v3618_v20 = vor.u32 %v3999_v17, %v3615_v19  ;;  %v3849_v17 = vld [vmem:[#allocation8 + $0x170] sm:$0xf0] }
  0xd7   :  { %2130 = vmatpush.bf16.msra.mxu3 %v3054_v25  ;;  %2117 = vmatpush.bf16.msra.mxu2 %v2830_v26  ;;  %v3419_v25 = vld [vmem:[#allocation8 + $0x4b4] sm:$0xf0] }
  0xd8   :  { %2156 = vmatpush.bf16.msrb.mxu1 %v3502_v35  ;;  %2143 = vmatpush.bf16.msrb.mxu0 %v3278_v36  ;;  %v3422_v26 = vor.u32 %v3950_v23, %v3419_v25  ;;  %v3394_v35 = vor.u32 %v3943_v32, %v3391_v34  ;;  %v3985_v36 = vld [vmem:[#allocation8 + $0x5b4] sm:$0xf]  ;;  %v3006_v23 = vor.u32 %v3849_v17, %v3005_v16  ;;  %v2977_v25 = vld [vmem:[#allocation8 + $0x120] sm:$0xf]  ;;  %v3705_v32 = vld [vmem:[#allocation8 + $0x6d0] sm:$0xf] }
  0xd9   :  { %v3909_v17 = vld [vmem:[#allocation8 + $0x354] sm:$0xf] }
  0xdb   :  { %2175 = vmatpush.bf16.msrb.mxu3 %v3254_v29  ;;  %2162 = vmatpush.bf16.msrb.mxu2 %v3030_v31  ;;  %v3590_v29 = vor.u32 %v3992_v27, %v3587_v28  ;;  %v2831_v31 = vld [vmem:[#allocation8 + $0x1c] sm:$0xf0] }
  0xdc   :  { %2201 = vmatpush.bf16.msra.mxu1 %v3702_v37  ;;  %2188 = vmatpush.bf16.msra.mxu0 %v3478_v4  ;;  %v2834_v33 = vor.u32 %v3803_v30, %v2831_v31  ;;  %v3559_v37 = vld [vmem:[#allocation8 + $0x5cc] sm:$0xf0]  ;;  %v3229_v4 = vld [vmem:[#allocation8 + $0x318] sm:$0xf]  ;;  %v3884_v31 = vld [vmem:[#allocation8 + $0x288] sm:$0xf0] }
  0xdd   :  { %v3562_v38 = vor.u32 %v3985_v36, %v3559_v37  ;;  %v3230_v2 = vor.u32 %v3905_v5, %v3229_v4  ;;  %v2949_v36 = vld [vmem:[#allocation8 + $0xe8] sm:$0xf]  ;;  %v3835_v37 = vld [vmem:[#allocation8 + $0x100] sm:$0xf0]  ;;  %v3821_v5 = vld [vmem:[#allocation8 + $0x90] sm:$0xf0] }
  0xdf   :  { %2176 = vmatpush.bf16.msrb.mxu3 %v3226_v40  ;;  %2163 = vmatpush.bf16.msrb.mxu2 %v3002_v42  ;;  %v3363_v40 = vld [vmem:[#allocation8 + $0x444] sm:$0xf0]  ;;  %v3978_v42 = vld [vmem:[#allocation8 + $0x57c] sm:$0xf] }
  0xe0   :  { %2202 = vmatpush.bf16.msra.mxu1 %v3674_v46  ;;  %2189 = vmatpush.bf16.msra.mxu0 %v3450_v14  ;;  %v3366_v41 = vor.u32 %v3936_v39, %v3363_v40  ;;  %v3534_v44 = vor.u32 %v3978_v42, %v3531_v43  ;;  %v3335_v46 = vld [vmem:[#allocation8 + $0x40c] sm:$0xf0]  ;;  %v3117_v40 = vld [vmem:[#allocation8 + $0x238] sm:$0xf]  ;;  %v3877_v43 = vld [vmem:[#allocation8 + $0x250] sm:$0xf0] }
  0xe3   :  { %2177 = vmatpush.bf16.msrb.mxu3 %v3198_v47  ;;  %2164 = vmatpush.bf16.msrb.mxu2 %v2974_v49  ;;  %v3338_v47 = vor.u32 %v3929_v45, %v3335_v46  ;;  %v3503_v49 = vld [vmem:[#allocation8 + $0x55c] sm:$0xf0]  ;;  %v4017_v45 = vld [vmem:[#allocation8 + $0x6b0] sm:$0xf0] }
  0xe4   :  { %2203 = vmatpush.bf16.msra.mxu1 %v3646_v9  ;;  %2190 = vmatpush.bf16.msra.mxu0 %v3422_v26  ;;  %v3506_v50 = vor.u32 %v3971_v48, %v3503_v49  ;;  %v3856_v9 = vld [vmem:[#allocation8 + $0x1a8] sm:$0xf0]  ;;  %v3842_v26 = vld [vmem:[#allocation8 + $0x138] sm:$0xf0]  ;;  %v2921_v48 = vld [vmem:[#allocation8 + $0xb0] sm:$0xf] }
  0xe5   :  { %v3034_v14 = vor.u32 %v3856_v9, %v3033_v8  ;;  %v2978_v34 = vor.u32 %v3842_v26, %v2977_v25  ;;  %v3061_v9 = vld [vmem:[#allocation8 + $0x1c8] sm:$0xf]  ;;  %v3593_v26 = vld [vmem:[#allocation8 + $0x5f0] sm:$0xf] }
  0xe7   :  { %2178 = vmatpush.bf16.msrb.mxu3 %v3170_v53  ;;  %2165 = vmatpush.bf16.msrb.mxu2 %v2946_v54  ;;  %v3310_v53 = vor.u32 %v3922_v51, %v3307_v52  ;;  %v3915_v54 = vld [vmem:[#allocation8 + $0x384] sm:$0xf]  ;;  %v3828_v51 = vld [vmem:[#allocation8 + $0xc8] sm:$0xf0]  ;;  %v3481_v52 = vld [vmem:[#allocation8 + $0x510] sm:$0xf] }
  0xe8   :  { %2204 = vmatpush.bf16.msra.mxu1 %v3618_v20  ;;  %2191 = vmatpush.bf16.msra.mxu0 %v3394_v35  ;;  %v3282_v56 = vor.u32 %v3915_v54, %v3279_v55  ;;  %v3173_v20 = vld [vmem:[#allocation8 + $0x2a8] sm:$0xf]  ;;  %v3118_v55 = vor.u32 %v3877_v43, %v3117_v40  ;;  %v3565_v40 = vld [vmem:[#allocation8 + $0x5b8] sm:$0xf] }
  0xe9   :  { %v3174_v28 = vor.u32 %v3891_v21, %v3173_v20  ;;  %v3814_v20 = vld [vmem:[#allocation8 + $0x58] sm:$0xf0]  ;;  %v3425_v21 = vld [vmem:[#allocation8 + $0x4a0] sm:$0xf] }
  0xeb   :  { %2179 = vmatpush.bf16.msrb.mxu3 %v3142_v57  ;;  %2166 = vmatpush.bf16.msrb.mxu2 %v2918_v1 }
  0xec   :  { %2205 = vmatpush.bf16.msra.mxu1 %v3590_v29  ;;  %2192 = vmatpush.bf16.msra.mxu0 %v3366_v41  ;;  %v3145_v29 = vld [vmem:[#allocation8 + $0x270] sm:$0xf] }
  0xef   :  { %2180 = vmatpush.bf16.msrb.mxu3 %v3114_v60  ;;  %2167 = vmatpush.bf16.msrb.mxu2 %v2890_v12  ;;  %v3257_v60 = vld [vmem:[#allocation8 + $0x350] sm:$0xf]  ;;  %v3201_v12 = vld [vmem:[#allocation8 + $0x2e0] sm:$0xf] }
  0xf0   :  { %2206 = vmatpush.bf16.msra.mxu1 %v3562_v38  ;;  %2193 = vmatpush.bf16.msra.mxu0 %v3338_v47  ;;  %v3258_v0 = vor.u32 %v3912_v62, %v3257_v60  ;;  %v3146_v38 = vor.u32 %v3884_v31, %v3145_v29  ;;  %v2950_v47 = vor.u32 %v3835_v37, %v2949_v36  ;;  %v3649_v60 = vld [vmem:[#allocation8 + $0x660] sm:$0xf]  ;;  %v4010_v62 = vld [vmem:[#allocation8 + $0x678] sm:$0xf0]  ;;  %v3231_v31 = vld [vmem:[#allocation8 + $0x334] sm:$0xf0] }
  0xf1   :  { %v3650_v8 = vor.u32 %v4010_v62, %v3649_v60  ;;  %v3853_v37 = vld [vmem:[#allocation8 + $0x194] sm:$0xf]  ;;  %v3341_v60 = vld [vmem:[#allocation8 + $0x3f8] sm:$0xf] }
  0xf2   :  { %v3933_v62 = vld [vmem:[#allocation8 + $0x410] sm:$0xf0] }
  0xf3   :  { %2181 = vmatpush.bf16.msrb.mxu3 %v3086_v7  ;;  %2168 = vmatpush.bf16.msrb.mxu2 %v2862_v24 }
  0xf4   :  { %2207 = vmatpush.bf16.msra.mxu1 %v3534_v44  ;;  %2194 = vmatpush.bf16.msra.mxu0 %v3310_v53  ;;  %v3677_v44 = vld [vmem:[#allocation8 + $0x698] sm:$0xf]  ;;  %v3968_v53 = vld [vmem:[#allocation8 + $0x528] sm:$0xf0] }
  0xf7   :  { %2182 = vmatpush.bf16.msrb.mxu3 %v3058_v18  ;;  %2169 = vmatpush.bf16.msrb.mxu2 %v2834_v33  ;;  %v3202_v18 = vor.u32 %v3898_v13, %v3201_v12  ;;  %v4024_v33 = vld [vmem:[#allocation8 + $0x6e8] sm:$0xf0]  ;;  %v4003_v12 = vld [vmem:[#allocation8 + $0x640] sm:$0xf0] }
  0xf8   :  { %2208 = vmatpush.bf16.msra.mxu1 %v3506_v50  ;;  %2195 = vmatpush.bf16.msra.mxu0 %v3282_v56  ;;  %v3706_v39 = vor.u32 %v4024_v33, %v3705_v32  ;;  %v3678_v56 = vor.u32 %v4017_v45, %v3677_v44  ;;  %v2837_v32 = vld [vmem:[#allocation8 + $0x8] sm:$0xf]  ;;  %v3807_v33 = vld [vmem:[#allocation8 + $0x20] sm:$0xf0] }
  0xf9   :  { %v2838_v43 = vor.u32 %v3807_v33, %v2837_v32  ;;  %v3895_v45 = vld [vmem:[#allocation8 + $0x2e4] sm:$0xf] }
 0x136   :  { %v625_v57 = vpop.f32.mrf.mxu0 }
 0x137   :  { %v638_v58 = vpop.f32.mrf.mxu1 }
 0x138   :  { %v639_v59 = vadd.f32 %v638_v58, %v625_v57  ;;  %v3089_v57 = vld [vmem:[#allocation8 + $0x200] sm:$0xf]  ;;  %v3870_v58 = vld [vmem:[#allocation8 + $0x218] sm:$0xf0] }
 0x13a   :  { %v695_v63 = vmax.f32 %v639_v59, 0.0 }
 0x13c   :  { %v4240_v1 = vpack.c.bf16 %v695_v63, %v695_v63  ;;  %v599_v3 = vpop.f32.mrf.mxu2  ;;  %v2922_v63 = vor.u32 %v3828_v51, %v2921_v48  ;;  %v3369_v48 = vld [vmem:[#allocation8 + $0x430] sm:$0xf]  ;;  %v3846_v51 = vld [vmem:[#allocation8 + $0x15c] sm:$0xf] }
 0x13d   :  { %v612_v6 = vpop.f32.mrf.mxu3 }
 0x13e   :  { %v613_v61 = vadd.f32 %v612_v6, %v599_v3  ;;  %2131 = vmatmul.bf16.vlgmr.msra.gmra.mxu3 %v4240_v1  ;;  %v627_v7 = vpop.f32.mrf.mxu0  ;;  %v2893_v3 = vld [vmem:[#allocation8 + $0x78] sm:$0xf] }
 0x13f   :  { %2227 = vmatpush.bf16.msra.mxu3 %v3258_v0  ;;  %v640_v10 = vpop.f32.mrf.mxu1  ;;  %v3482_v0 = vor.u32 %v3968_v53, %v3481_v52  ;;  %v3453_v6 = vld [vmem:[#allocation8 + $0x4d8] sm:$0xf]  ;;  %v3090_v7 = vor.u32 %v3870_v58, %v3089_v57  ;;  %v3888_v57 = vld [vmem:[#allocation8 + $0x2ac] sm:$0xf]  ;;  %v3175_v58 = vld [vmem:[#allocation8 + $0x2c4] sm:$0xf0] }
 0x140   :  { %v694_v11 = vmax.f32 %v613_v61, 0.0  ;;  %v3961_v61 = vld [vmem:[#allocation8 + $0x4f0] sm:$0xf0]  ;;  %v3007_v52 = vld [vmem:[#allocation8 + $0x174] sm:$0xf0] }
 0x141   :  { %v3454_v16 = vor.u32 %v3961_v61, %v3453_v6  ;;  %v3509_v6 = vld [vmem:[#allocation8 + $0x548] sm:$0xf]  ;;  %v3975_v61 = vld [vmem:[#allocation8 + $0x560] sm:$0xf0] }
 0x142   :  { %v4243_v15 = vpack.c.bf16 %v694_v11, %v694_v11  ;;  %v3621_v11 = vld [vmem:[#allocation8 + $0x628] sm:$0xf] }
 0x143   :  { %2228 = vmatpush.bf16.msra.mxu3 %v3230_v2  ;;  %v3863_v2 = vld [vmem:[#allocation8 + $0x1e0] sm:$0xf0] }
 0x144   :  { %2118 = vmatmul.bf16.vlgmr.msra.gmra.mxu2 %v4243_v15  ;;  %v601_v19 = vpop.f32.mrf.mxu2 }
 0x145   :  { %2214 = vmatpush.bf16.msra.mxu2 %v3034_v14  ;;  %v614_v22 = vpop.f32.mrf.mxu3  ;;  %v2894_v14 = vor.u32 %v3821_v5, %v2893_v3  ;;  %v2865_v19 = vld [vmem:[#allocation8 + $0x40] sm:$0xf]  ;;  %v3178_v5 = vor.u32 %v3888_v57, %v3175_v58  ;;  %v3951_v58 = vld [vmem:[#allocation8 + $0x4a4] sm:$0xf] }
 0x146   :  { %v677_v24 = vpop.f32.mrf.mxu0  ;;  %v3954_v22 = vld [vmem:[#allocation8 + $0x4b8] sm:$0xf0]  ;;  %v2979_v3 = vld [vmem:[#allocation8 + $0x13c] sm:$0xf0] }
 0x147   :  { %2229 = vmatpush.bf16.msra.mxu3 %v3202_v18  ;;  %v690_v27 = vpop.f32.mrf.mxu1  ;;  %v3259_v18 = vld [vmem:[#allocation8 + $0x36c] sm:$0xf0]  ;;  %v3426_v29 = vor.u32 %v3954_v22, %v3425_v21  ;;  %v3119_v22 = vld [vmem:[#allocation8 + $0x254] sm:$0xf0]  ;;  %v2867_v57 = vld [vmem:[#allocation8 + $0x5c] sm:$0xf0] }
 0x148   :  { %v691_v30 = vadd.f32 %v690_v27, %v677_v24  ;;  %v3622_v24 = vor.u32 %v4003_v12, %v3621_v11  ;;  %v3262_v25 = vor.u32 %v3909_v17, %v3259_v18  ;;  %v3996_v27 = vld [vmem:[#allocation8 + $0x608] sm:$0xf0]  ;;  %v3313_v12 = vld [vmem:[#allocation8 + $0x3c0] sm:$0xf]  ;;  %v2951_v17 = vld [vmem:[#allocation8 + $0x104] sm:$0xf0] }
 0x149   :  { %2215 = vmatpush.bf16.msra.mxu2 %v3006_v23  ;;  %v3062_v23 = vor.u32 %v3863_v2, %v3061_v9  ;;  %v3594_v36 = vor.u32 %v3996_v27, %v3593_v26  ;;  %v3147_v9 = vld [vmem:[#allocation8 + $0x28c] sm:$0xf0]  ;;  %v3285_v26 = vld [vmem:[#allocation8 + $0x388] sm:$0xf]  ;;  %v3919_v27 = vld [vmem:[#allocation8 + $0x3a0] sm:$0xf0] }
 0x14a   :  { %v697_v35 = vmax.f32 %v691_v30, 0.0  ;;  %v3902_v30 = vld [vmem:[#allocation8 + $0x31c] sm:$0xf]  ;;  %v3707_v2 = vld [vmem:[#allocation8 + $0x6ec] sm:$0xf0] }
 0x14b   :  { %2230 = vmatpush.bf16.msra.mxu3 %v3174_v28  ;;  %v2866_v28 = vor.u32 %v3814_v20, %v2865_v19  ;;  %v3874_v20 = vld [vmem:[#allocation8 + $0x23c] sm:$0xf] }
 0x14c   :  { %v4246_v41 = vpack.c.bf16 %v697_v35, %v697_v35  ;;  %v651_v42 = vpop.f32.mrf.mxu2  ;;  %v3947_v35 = vld [vmem:[#allocation8 + $0x480] sm:$0xf0]  ;;  %v3122_v32 = vor.u32 %v3874_v20, %v3119_v22  ;;  %v3209_v20 = vld [vmem:[#allocation8 + $0x2e8] sm:$0xf] }
 0x14d   :  { %2216 = vmatpush.bf16.msra.mxu2 %v2978_v34  ;;  %v664_v46 = vpop.f32.mrf.mxu3  ;;  %v3397_v34 = vld [vmem:[#allocation8 + $0x468] sm:$0xf] }
 0x14e   :  { %v665_v49 = vadd.f32 %v664_v46, %v651_v42  ;;  %2157 = vmatmul.bf16.vlgmr.msrb.gmra.mxu1 %v4246_v41  ;;  %2183 = vmatmul.bf16.vlgmr.msrb.gmra.mxu3 %v4240_v1  ;;  %v679_v50 = vpop.f32.mrf.mxu0  ;;  %v3989_v42 = vld [vmem:[#allocation8 + $0x5d0] sm:$0xf0]  ;;  %v3398_v44 = vor.u32 %v3947_v35, %v3397_v34  ;;  %v3203_v46 = vld [vmem:[#allocation8 + $0x2fc] sm:$0xf0]  ;;  %v3867_v34 = vld [vmem:[#allocation8 + $0x204] sm:$0xf]  ;;  %v3286_v35 = vor.u32 %v3919_v27, %v3285_v26 }
 0x14f   :  { %2231 = vmatpush.bf16.msra.mxu3 %v3146_v38  ;;  %2253 = vmatpush.bf16.msrb.mxu1 %v3706_v39  ;;  %v692_v54 = vpop.f32.mrf.mxu1  ;;  %v3035_v38 = vld [vmem:[#allocation8 + $0x1ac] sm:$0xf0]  ;;  %v3234_v39 = vor.u32 %v3902_v30, %v3231_v31  ;;  %v3566_v50 = vor.u32 %v3989_v42, %v3565_v40  ;;  %v3206_v53 = vor.u32 %v3895_v45, %v3203_v46  ;;  %v3965_v30 = vld [vmem:[#allocation8 + $0x514] sm:$0xf]  ;;  %v3818_v42 = vld [vmem:[#allocation8 + $0x7c] sm:$0xf] }
 0x150   :  { %v696_v59 = vmax.f32 %v665_v49, 0.0  ;;  %v3940_v49 = vld [vmem:[#allocation8 + $0x448] sm:$0xf0]  ;;  %v3537_v54 = vld [vmem:[#allocation8 + $0x580] sm:$0xf] }
 0x151   :  { %2217 = vmatpush.bf16.msra.mxu2 %v2950_v47  ;;  %v3038_v47 = vor.u32 %v3853_v37, %v3035_v38  ;;  %v3483_v31 = vld [vmem:[#allocation8 + $0x52c] sm:$0xf0]  ;;  %v4007_v37 = vld [vmem:[#allocation8 + $0x664] sm:$0xf]  ;;  %v3651_v38 = vld [vmem:[#allocation8 + $0x67c] sm:$0xf0] }
 0x152   :  { %v4250_v4 = vpack.c.bf16 %v696_v59, %v696_v59  ;;  %v3010_v59 = vor.u32 %v3846_v51, %v3007_v52  ;;  %v3486_v40 = vor.u32 %v3965_v30, %v3483_v31  ;;  %v3455_v45 = vld [vmem:[#allocation8 + $0x4f4] sm:$0xf0]  ;;  %v3623_v51 = vld [vmem:[#allocation8 + $0x644] sm:$0xf0]  ;;  %v3013_v26 = vld [vmem:[#allocation8 + $0x160] sm:$0xf] }
 0x153   :  { %2232 = vmatpush.bf16.msra.mxu3 %v3118_v55  ;;  %2254 = vmatpush.bf16.msrb.mxu1 %v3678_v56  ;;  %v3982_v55 = vld [vmem:[#allocation8 + $0x598] sm:$0xf0]  ;;  %v3370_v56 = vor.u32 %v3940_v49, %v3369_v48  ;;  %v3860_v48 = vld [vmem:[#allocation8 + $0x1cc] sm:$0xf]  ;;  %v3063_v49 = vld [vmem:[#allocation8 + $0x1e4] sm:$0xf0] }
 0x154   :  { %2144 = vmatmul.bf16.vlgmr.msrb.gmra.mxu0 %v4250_v4  ;;  %2170 = vmatmul.bf16.vlgmr.msrb.gmra.mxu2 %v4243_v15  ;;  %v653_v10 = vpop.f32.mrf.mxu2  ;;  %v3850_v27 = vld [vmem:[#allocation8 + $0x178] sm:$0xf0]  ;;  %v3539_v30 = vld [vmem:[#allocation8 + $0x59c] sm:$0xf0] }
 0x155   :  { %2218 = vmatpush.bf16.msra.mxu2 %v2922_v63  ;;  %2240 = vmatpush.bf16.msrb.mxu0 %v3482_v0  ;;  %v666_v13 = vpop.f32.mrf.mxu3  ;;  %v3538_v63 = vor.u32 %v3982_v55, %v3537_v54  ;;  %v3839_v0 = vld [vmem:[#allocation8 + $0x124] sm:$0xf]  ;;  %v4021_v10 = vld [vmem:[#allocation8 + $0x6d4] sm:$0xf]  ;;  %v3265_v54 = vld [vmem:[#allocation8 + $0x358] sm:$0xf] }
 0x156   :  { %v2982_v11 = vor.u32 %v3839_v0, %v2979_v3  ;;  %v3926_v13 = vld [vmem:[#allocation8 + $0x3d8] sm:$0xf0]  ;;  %v3710_v19 = vor.u32 %v4021_v10, %v3707_v2  ;;  %v3913_v55 = vld [vmem:[#allocation8 + $0x370] sm:$0xf0]  ;;  %v3595_v3 = vld [vmem:[#allocation8 + $0x60c] sm:$0xf0] }
 0x157   :  { %2233 = vmatpush.bf16.msra.mxu3 %v3090_v7  ;;  %2255 = vmatpush.bf16.msrb.mxu1 %v3650_v8  ;;  %v3881_v7 = vld [vmem:[#allocation8 + $0x274] sm:$0xf]  ;;  %v3342_v8 = vor.u32 %v3933_v62, %v3341_v60  ;;  %v3314_v21 = vor.u32 %v3926_v13, %v3313_v12  ;;  %v3066_v60 = vor.u32 %v3860_v48, %v3063_v49  ;;  %v3944_v10 = vld [vmem:[#allocation8 + $0x46c] sm:$0xf]  ;;  %v3399_v2 = vld [vmem:[#allocation8 + $0x484] sm:$0xf0] }
 0x158   :  { %v3150_v18 = vor.u32 %v3881_v7, %v3147_v9  ;;  %v3993_v0 = vld [vmem:[#allocation8 + $0x5f4] sm:$0xf]  ;;  %v3906_v7 = vld [vmem:[#allocation8 + $0x338] sm:$0xf0]  ;;  %v2839_v9 = vld [vmem:[#allocation8 + $0x24] sm:$0xf0] }
 0x159   :  { %2219 = vmatpush.bf16.msra.mxu2 %v2894_v14  ;;  %2241 = vmatpush.bf16.msrb.mxu0 %v3454_v16  ;;  %v3510_v14 = vor.u32 %v3975_v61, %v3509_v6  ;;  %v3832_v16 = vld [vmem:[#allocation8 + $0xec] sm:$0xf]  ;;  %v3237_v61 = vld [vmem:[#allocation8 + $0x320] sm:$0xf]  ;;  %v3041_v12 = vld [vmem:[#allocation8 + $0x198] sm:$0xf] }
 0x15a   :  { %v3857_v13 = vld [vmem:[#allocation8 + $0x1b0] sm:$0xf0] }
 0x15b   :  { %2234 = vmatpush.bf16.msra.mxu3 %v3062_v23  ;;  %2256 = vmatpush.bf16.msrb.mxu1 %v3622_v24  ;;  %v4014_v23 = vld [vmem:[#allocation8 + $0x69c] sm:$0xf]  ;;  %v3679_v24 = vld [vmem:[#allocation8 + $0x6b4] sm:$0xf0]  ;;  %v3042_v22 = vor.u32 %v3857_v13, %v3041_v12  ;;  %v4025_v48 = vld [vmem:[#allocation8 + $0x6f0] sm:$0xf0] }
 0x15c   :  { %v3682_v33 = vor.u32 %v4014_v23, %v3679_v24  ;;  %v3937_v23 = vld [vmem:[#allocation8 + $0x434] sm:$0xf]  ;;  %v3371_v24 = vld [vmem:[#allocation8 + $0x44c] sm:$0xf0] }
 0x15d   :  { %2220 = vmatpush.bf16.msra.mxu2 %v2866_v28  ;;  %2242 = vmatpush.bf16.msrb.mxu0 %v3426_v29  ;;  %v3825_v28 = vld [vmem:[#allocation8 + $0xb4] sm:$0xf]  ;;  %v2923_v29 = vld [vmem:[#allocation8 + $0xcc] sm:$0xf0]  ;;  %v3374_v31 = vor.u32 %v3937_v23, %v3371_v24  ;;  %v3864_v24 = vld [vmem:[#allocation8 + $0x1e8] sm:$0xf0] }
 0x15e   :  { %2209 = vmatmul.bf16.vlgmr.msra.gmra.mxu1 %v4246_v41  ;;  %2235 = vmatmul.bf16.vlgmr.msra.gmra.mxu3 %v4240_v1 }
 0x15f   :  { %2279 = vmatpush.bf16.msrb.mxu3 %v3262_v25  ;;  %2257 = vmatpush.bf16.msrb.mxu1 %v3594_v36  ;;  %v2954_v25 = vor.u32 %v3832_v16, %v2951_v17  ;;  %v3091_v36 = vld [vmem:[#allocation8 + $0x21c] sm:$0xf0]  ;;  %v3986_v16 = vld [vmem:[#allocation8 + $0x5bc] sm:$0xf]  ;;  %v3567_v17 = vld [vmem:[#allocation8 + $0x5d4] sm:$0xf0] }
 0x160   :  { %v3094_v46 = vor.u32 %v3867_v34, %v3091_v36  ;;  %v3014_v34 = vor.u32 %v3850_v27, %v3013_v26  ;;  %v3343_v36 = vld [vmem:[#allocation8 + $0x414] sm:$0xf0]  ;;  %v4004_v26 = vld [vmem:[#allocation8 + $0x648] sm:$0xf0] }
 0x161   :  { %2221 = vmatpush.bf16.msra.mxu2 %v2838_v43  ;;  %2243 = vmatpush.bf16.msrb.mxu0 %v3398_v44  ;;  %v2895_v43 = vld [vmem:[#allocation8 + $0x94] sm:$0xf0]  ;;  %v3958_v44 = vld [vmem:[#allocation8 + $0x4dc] sm:$0xf] }
 0x162   :  { %v2898_v52 = vor.u32 %v3818_v42, %v2895_v43  ;;  %v3972_v42 = vld [vmem:[#allocation8 + $0x54c] sm:$0xf]  ;;  %v3511_v43 = vld [vmem:[#allocation8 + $0x564] sm:$0xf0] }
 0x163   :  { %2280 = vmatpush.bf16.msrb.mxu3 %v3234_v39  ;;  %2258 = vmatpush.bf16.msrb.mxu1 %v3566_v50  ;;  %v2926_v39 = vor.u32 %v3825_v28, %v2923_v29  ;;  %v4000_v50 = vld [vmem:[#allocation8 + $0x62c] sm:$0xf]  ;;  %v3979_v29 = vld [vmem:[#allocation8 + $0x584] sm:$0xf] }
 0x164   :  { %2196 = vmatmul.bf16.vlgmr.msra.gmra.mxu0 %v4250_v4  ;;  %2222 = vmatmul.bf16.vlgmr.msra.gmra.mxu2 %v4243_v15  ;;  %v3626_v62 = vor.u32 %v4000_v50, %v3623_v51  ;;  %v3923_v50 = vld [vmem:[#allocation8 + $0x3c4] sm:$0xf]  ;;  %v3315_v51 = vld [vmem:[#allocation8 + $0x3dc] sm:$0xf0] }
 0x165   :  { %2266 = vmatpush.bf16.msrb.mxu2 %v3038_v47  ;;  %2244 = vmatpush.bf16.msrb.mxu0 %v3370_v56  ;;  %v3654_v47 = vor.u32 %v4007_v37, %v3651_v38  ;;  %v3811_v56 = vld [vmem:[#allocation8 + $0x44] sm:$0xf]  ;;  %v3542_v37 = vor.u32 %v3979_v29, %v3539_v30  ;;  %v2985_v38 = vld [vmem:[#allocation8 + $0x128] sm:$0xf]  ;;  %v3910_v29 = vld [vmem:[#allocation8 + $0x35c] sm:$0xf] }
 0x166   :  { %v3267_v30 = vld [vmem:[#allocation8 + $0x374] sm:$0xf0] }
 0x167   :  { %2281 = vmatpush.bf16.msrb.mxu3 %v3206_v53  ;;  %2259 = vmatpush.bf16.msrb.mxu1 %v3538_v63  ;;  %v3458_v53 = vor.u32 %v3958_v44, %v3455_v45  ;;  %v3266_v63 = vor.u32 %v3913_v55, %v3265_v54  ;;  %v3153_v44 = vld [vmem:[#allocation8 + $0x278] sm:$0xf]  ;;  %v3836_v54 = vld [vmem:[#allocation8 + $0x108] sm:$0xf0] }
 0x169   :  { %2267 = vmatpush.bf16.msrb.mxu2 %v3010_v59  ;;  %2245 = vmatpush.bf16.msrb.mxu0 %v3342_v8  ;;  %v3427_v59 = vld [vmem:[#allocation8 + $0x4bc] sm:$0xf0]  ;;  %v3804_v8 = vld [vmem:[#allocation8 + $0xc] sm:$0xf] }
 0x16a   :  { %v3430_v6 = vor.u32 %v3951_v58, %v3427_v59  ;;  %v3318_v58 = vor.u32 %v3923_v50, %v3315_v51  ;;  %v3878_v59 = vld [vmem:[#allocation8 + $0x258] sm:$0xf0]  ;;  %v3043_v50 = vld [vmem:[#allocation8 + $0x1b4] sm:$0xf0] }
 0x16b   :  { %2282 = vmatpush.bf16.msrb.mxu3 %v3178_v5  ;;  %2260 = vmatpush.bf16.msrb.mxu1 %v3510_v14  ;;  %v2870_v5 = vor.u32 %v3811_v56, %v2867_v57  ;;  %v3238_v14 = vor.u32 %v3906_v7, %v3237_v61  ;;  %v3125_v57 = vld [vmem:[#allocation8 + $0x240] sm:$0xf]  ;;  %v3489_v61 = vld [vmem:[#allocation8 + $0x518] sm:$0xf]  ;;  %v3969_v7 = vld [vmem:[#allocation8 + $0x530] sm:$0xf0] }
 0x16c   :  { %v3490_v13 = vor.u32 %v3969_v7, %v3489_v61  ;;  %v3545_v61 = vld [vmem:[#allocation8 + $0x588] sm:$0xf]  ;;  %v3983_v7 = vld [vmem:[#allocation8 + $0x5a0] sm:$0xf0] }
 0x16d   :  { %2268 = vmatpush.bf16.msrb.mxu2 %v2982_v11  ;;  %2246 = vmatpush.bf16.msrb.mxu0 %v3314_v21  ;;  %v3598_v11 = vor.u32 %v3993_v0, %v3595_v3  ;;  %v3899_v21 = vld [vmem:[#allocation8 + $0x300] sm:$0xf0]  ;;  %v3916_v0 = vld [vmem:[#allocation8 + $0x38c] sm:$0xf]  ;;  %v3287_v3 = vld [vmem:[#allocation8 + $0x3a4] sm:$0xf0] }
 0x16e   :  { %2261 = vmatmul.bf16.vlgmr.msrb.gmra.mxu1 %v4246_v41  ;;  %v3210_v28 = vor.u32 %v3899_v21, %v3209_v20  ;;  %v3962_v20 = vld [vmem:[#allocation8 + $0x4f8] sm:$0xf0] }
 0x16f   :  { %2283 = vmatpush.bf16.msrb.mxu3 %v3150_v18  ;;  %2305 = vmatpush.bf16.msra.mxu1 %v3710_v19  ;;  %v2842_v18 = vor.u32 %v3804_v8, %v2839_v9  ;;  %v3402_v19 = vor.u32 %v3944_v10, %v3399_v2  ;;  %v3126_v8 = vor.u32 %v3878_v59, %v3125_v57  ;;  %v3097_v2 = vld [vmem:[#allocation8 + $0x208] sm:$0xf]  ;;  %v3896_v57 = vld [vmem:[#allocation8 + $0x2ec] sm:$0xf] }
 0x170   :  { %v3290_v10 = vor.u32 %v3916_v0, %v3287_v3  ;;  %v3211_v59 = vld [vmem:[#allocation8 + $0x304] sm:$0xf0]  ;;  %v3015_v0 = vld [vmem:[#allocation8 + $0x17c] sm:$0xf0] }
 0x171   :  { %2269 = vmatpush.bf16.msrb.mxu2 %v2954_v25  ;;  %2247 = vmatpush.bf16.msrb.mxu0 %v3286_v35  ;;  %v3570_v25 = vor.u32 %v3986_v16, %v3567_v17  ;;  %v3930_v35 = vld [vmem:[#allocation8 + $0x3fc] sm:$0xf]  ;;  %v4011_v16 = vld [vmem:[#allocation8 + $0x680] sm:$0xf0]  ;;  %v2901_v17 = vld [vmem:[#allocation8 + $0x80] sm:$0xf] }
 0x172   :  { %v3346_v45 = vor.u32 %v3930_v35, %v3343_v36 }
 0x173   :  { %2284 = vmatpush.bf16.msrb.mxu3 %v3122_v32  ;;  %2306 = vmatpush.bf16.msra.mxu1 %v3682_v33  ;;  %v3181_v32 = vld [vmem:[#allocation8 + $0x2b0] sm:$0xf]  ;;  %v3892_v33 = vld [vmem:[#allocation8 + $0x2c8] sm:$0xf0] }
 0x174   :  { %2248 = vmatmul.bf16.vlgmr.msrb.gmra.mxu0 %v4250_v4 }
 0x175   :  { %2270 = vmatpush.bf16.msrb.mxu2 %v2926_v39  ;;  %2292 = vmatpush.bf16.msra.mxu0 %v3486_v40  ;;  %v3843_v39 = vld [vmem:[#allocation8 + $0x140] sm:$0xf0]  ;;  %v3182_v40 = vor.u32 %v3892_v33, %v3181_v32  ;;  %v3433_v33 = vld [vmem:[#allocation8 + $0x4a8] sm:$0xf] }
 0x176   :  { %v2986_v49 = vor.u32 %v3843_v39, %v2985_v38  ;;  %v3815_v32 = vld [vmem:[#allocation8 + $0x60] sm:$0xf0]  ;;  %v3601_v38 = vld [vmem:[#allocation8 + $0x5f8] sm:$0xf]  ;;  %v3997_v39 = vld [vmem:[#allocation8 + $0x610] sm:$0xf0] }
 0x177   :  { %2285 = vmatpush.bf16.msrb.mxu3 %v3094_v46  ;;  %2307 = vmatpush.bf16.msra.mxu1 %v3654_v47  ;;  %v3885_v46 = vld [vmem:[#allocation8 + $0x290] sm:$0xf0]  ;;  %v3713_v47 = vld [vmem:[#allocation8 + $0x6d8] sm:$0xf]  ;;  %v3602_v51 = vor.u32 %v3997_v39, %v3601_v38  ;;  %v3293_v38 = vld [vmem:[#allocation8 + $0x390] sm:$0xf] }
 0x178   :  { %v3154_v55 = vor.u32 %v3885_v46, %v3153_v44  ;;  %v3714_v56 = vor.u32 %v4025_v48, %v3713_v47  ;;  %v3239_v44 = vld [vmem:[#allocation8 + $0x33c] sm:$0xf0]  ;;  %v3808_v46 = vld [vmem:[#allocation8 + $0x28] sm:$0xf0]  ;;  %v3405_v47 = vld [vmem:[#allocation8 + $0x470] sm:$0xf] }
 0x179   :  { %2271 = vmatpush.bf16.msrb.mxu2 %v2898_v52  ;;  %2293 = vmatpush.bf16.msra.mxu0 %v3458_v53  ;;  %v3514_v52 = vor.u32 %v3972_v42, %v3511_v43  ;;  %v2957_v53 = vld [vmem:[#allocation8 + $0xf0] sm:$0xf]  ;;  %v3903_v43 = vld [vmem:[#allocation8 + $0x324] sm:$0xf]  ;;  %v3948_v48 = vld [vmem:[#allocation8 + $0x488] sm:$0xf0] }
 0x17a   :  { %v3920_v39 = vld [vmem:[#allocation8 + $0x3a8] sm:$0xf0] }
 0x17b   :  { %2286 = vmatpush.bf16.msrb.mxu3 %v3066_v60  ;;  %2308 = vmatpush.bf16.msra.mxu1 %v3626_v62  ;;  %v3685_v60 = vld [vmem:[#allocation8 + $0x6a0] sm:$0xf]  ;;  %v4018_v62 = vld [vmem:[#allocation8 + $0x6b8] sm:$0xf0] }
 0x17c   :  { %v3686_v9 = vor.u32 %v4018_v62, %v3685_v60  ;;  %v3377_v60 = vld [vmem:[#allocation8 + $0x438] sm:$0xf]  ;;  %v3941_v62 = vld [vmem:[#allocation8 + $0x450] sm:$0xf0] }
 0x17d   :  { %2272 = vmatpush.bf16.msrb.mxu2 %v2870_v5  ;;  %2294 = vmatpush.bf16.msra.mxu0 %v3430_v6  ;;  %v2929_v5 = vld [vmem:[#allocation8 + $0xb8] sm:$0xf]  ;;  %v3829_v6 = vld [vmem:[#allocation8 + $0xd0] sm:$0xf0] }
 0x17e   :  { %2287 = vmatmul.bf16.vlgmr.msrb.gmra.mxu3 %v4240_v1  ;;  %v2930_v12 = vor.u32 %v3829_v6, %v2929_v5  ;;  %v3214_v5 = vor.u32 %v3896_v57, %v3211_v59  ;;  %v3378_v6 = vor.u32 %v3941_v62, %v3377_v60  ;;  %v3463_v57 = vld [vmem:[#allocation8 + $0x4fc] sm:$0xf0]  ;;  %v3861_v59 = vld [vmem:[#allocation8 + $0x1d4] sm:$0xf] }
 0x17f   :  { %2331 = vmatpush.bf16.msra.mxu3 %v3266_v63  ;;  %2309 = vmatpush.bf16.msra.mxu1 %v3598_v11  ;;  %v2958_v63 = vor.u32 %v3836_v54, %v2957_v53  ;;  %v3871_v11 = vld [vmem:[#allocation8 + $0x220] sm:$0xf0]  ;;  %v3406_v54 = vor.u32 %v3948_v48, %v3405_v47  ;;  %v3294_v47 = vor.u32 %v3920_v39, %v3293_v38 }
 0x180   :  { %v3098_v21 = vor.u32 %v3871_v11, %v3097_v2  ;;  %v3349_v2 = vld [vmem:[#allocation8 + $0x400] sm:$0xf]  ;;  %v3934_v11 = vld [vmem:[#allocation8 + $0x418] sm:$0xf0]  ;;  %v3851_v38 = vld [vmem:[#allocation8 + $0x180] sm:$0xf0] }
 0x181   :  { %2273 = vmatpush.bf16.msrb.mxu2 %v2842_v18  ;;  %2295 = vmatpush.bf16.msra.mxu0 %v3402_v19  ;;  %v3822_v18 = vld [vmem:[#allocation8 + $0x98] sm:$0xf0]  ;;  %v3461_v19 = vld [vmem:[#allocation8 + $0x4e0] sm:$0xf] }
 0x182   :  { %v2902_v27 = vor.u32 %v3822_v18, %v2901_v17  ;;  %v3350_v18 = vor.u32 %v3934_v11, %v3349_v2 }
 0x183   :  { %2332 = vmatpush.bf16.msra.mxu3 %v3238_v14  ;;  %2310 = vmatpush.bf16.msra.mxu1 %v3570_v25  ;;  %v3657_v14 = vld [vmem:[#allocation8 + $0x668] sm:$0xf]  ;;  %v3629_v25 = vld [vmem:[#allocation8 + $0x630] sm:$0xf] }
 0x184   :  { %2274 = vmatmul.bf16.vlgmr.msrb.gmra.mxu2 %v4243_v15  ;;  %v3658_v23 = vor.u32 %v4011_v16, %v3657_v14  ;;  %v3630_v36 = vor.u32 %v4004_v26, %v3629_v25  ;;  %v3546_v14 = vor.u32 %v3983_v7, %v3545_v61  ;;  %v3517_v16 = vld [vmem:[#allocation8 + $0x550] sm:$0xf]  ;;  %v3321_v25 = vld [vmem:[#allocation8 + $0x3c8] sm:$0xf]  ;;  %v3927_v26 = vld [vmem:[#allocation8 + $0x3e0] sm:$0xf0] }
 0x185   :  { %2318 = vmatpush.bf16.msra.mxu2 %v3042_v22  ;;  %2296 = vmatpush.bf16.msra.mxu0 %v3374_v31  ;;  %v3069_v22 = vld [vmem:[#allocation8 + $0x1d0] sm:$0xf]  ;;  %v2873_v31 = vld [vmem:[#allocation8 + $0x48] sm:$0xf]  ;;  %v3914_v61 = vld [vmem:[#allocation8 + $0x378] sm:$0xf0] }
 0x186   :  { %v3070_v35 = vor.u32 %v3864_v24, %v3069_v22  ;;  %v3715_v24 = vld [vmem:[#allocation8 + $0x6f4] sm:$0xf0]  ;;  %v3812_v7 = vld [vmem:[#allocation8 + $0x4c] sm:$0xf] }
 0x187   :  { %2333 = vmatpush.bf16.msra.mxu3 %v3210_v28  ;;  %2311 = vmatpush.bf16.msra.mxu1 %v3542_v37  ;;  %v3462_v28 = vor.u32 %v3962_v20, %v3461_v19  ;;  %v3270_v37 = vor.u32 %v3910_v29, %v3267_v30  ;;  %v3976_v19 = vld [vmem:[#allocation8 + $0x568] sm:$0xf0]  ;;  %v3882_v20 = vld [vmem:[#allocation8 + $0x27c] sm:$0xf] }
 0x188   :  { %v3518_v29 = vor.u32 %v3976_v19, %v3517_v16  ;;  %v3907_v19 = vld [vmem:[#allocation8 + $0x340] sm:$0xf0] }
 0x189   :  { %2319 = vmatpush.bf16.msra.mxu2 %v3014_v34  ;;  %2297 = vmatpush.bf16.msra.mxu0 %v3346_v45  ;;  %v3955_v34 = vld [vmem:[#allocation8 + $0x4c0] sm:$0xf0]  ;;  %v2845_v45 = vld [vmem:[#allocation8 + $0x10] sm:$0xf] }
 0x18a   :  { %v3434_v42 = vor.u32 %v3955_v34, %v3433_v33  ;;  %v2846_v53 = vor.u32 %v3808_v46, %v2845_v45  ;;  %v3127_v33 = vld [vmem:[#allocation8 + $0x25c] sm:$0xf0]  ;;  %v3322_v34 = vor.u32 %v3927_v26, %v3321_v25  ;;  %v3858_v25 = vld [vmem:[#allocation8 + $0x1b8] sm:$0xf0] }
 0x18b   :  { %2334 = vmatpush.bf16.msra.mxu3 %v3182_v40  ;;  %2312 = vmatpush.bf16.msra.mxu1 %v3514_v52  ;;  %v2874_v40 = vor.u32 %v3815_v32, %v2873_v31  ;;  %v3242_v52 = vor.u32 %v3903_v43, %v3239_v44  ;;  %v3875_v32 = vld [vmem:[#allocation8 + $0x244] sm:$0xf]  ;;  %v3966_v43 = vld [vmem:[#allocation8 + $0x51c] sm:$0xf]  ;;  %v3491_v44 = vld [vmem:[#allocation8 + $0x534] sm:$0xf0] }
 0x18c   :  { %v3130_v45 = vor.u32 %v3875_v32, %v3127_v33  ;;  %v3217_v32 = vld [vmem:[#allocation8 + $0x2f0] sm:$0xf] }
 0x18d   :  { %2320 = vmatpush.bf16.msra.mxu2 %v2986_v49  ;;  %2298 = vmatpush.bf16.msra.mxu0 %v3318_v58  ;;  %v3854_v49 = vld [vmem:[#allocation8 + $0x19c] sm:$0xf] }
 0x18e   :  { %2313 = vmatmul.bf16.vlgmr.msra.gmra.mxu1 %v4246_v41  ;;  %v3046_v58 = vor.u32 %v3854_v49, %v3043_v50  ;;  %v3868_v49 = vld [vmem:[#allocation8 + $0x20c] sm:$0xf]  ;;  %v3099_v50 = vld [vmem:[#allocation8 + $0x224] sm:$0xf0] }
 0x18f   :  { %2335 = vmatpush.bf16.msra.mxu3 %v3154_v55  ;;  %2357 = vmatpush.bf16.msrb.mxu1 %v3714_v56  ;;  %v3573_v55 = vld [vmem:[#allocation8 + $0x5c0] sm:$0xf]  ;;  %v3990_v56 = vld [vmem:[#allocation8 + $0x5d8] sm:$0xf0] }
 0x190   :  { %v3574_v3 = vor.u32 %v3990_v56, %v3573_v55  ;;  %v2903_v55 = vld [vmem:[#allocation8 + $0x9c] sm:$0xf0]  ;;  %v3959_v56 = vld [vmem:[#allocation8 + $0x4e4] sm:$0xf] }
 0x191   :  { %2321 = vmatpush.bf16.msra.mxu2 %v2958_v63  ;;  %2299 = vmatpush.bf16.msra.mxu0 %v3290_v10  ;;  %v3847_v63 = vld [vmem:[#allocation8 + $0x164] sm:$0xf]  ;;  %v3183_v10 = vld [vmem:[#allocation8 + $0x2cc] sm:$0xf0] }
 0x193   :  { %2336 = vmatpush.bf16.msra.mxu3 %v3126_v8  ;;  %2358 = vmatpush.bf16.msrb.mxu1 %v3686_v9  ;;  %v3889_v8 = vld [vmem:[#allocation8 + $0x2b4] sm:$0xf]  ;;  %v3018_v9 = vor.u32 %v3847_v63, %v3015_v0  ;;  %v3071_v63 = vld [vmem:[#allocation8 + $0x1ec] sm:$0xf0] }
 0x194   :  { %2300 = vmatmul.bf16.vlgmr.msra.gmra.mxu0 %v4250_v4  ;;  %v3186_v17 = vor.u32 %v3889_v8, %v3183_v10  ;;  %v4001_v0 = vld [vmem:[#allocation8 + $0x634] sm:$0xf]  ;;  %v2875_v8 = vld [vmem:[#allocation8 + $0x64] sm:$0xf0]  ;;  %v3074_v2 = vor.u32 %v3861_v59, %v3071_v63  ;;  %v3924_v63 = vld [vmem:[#allocation8 + $0x3cc] sm:$0xf] }
 0x195   :  { %2322 = vmatpush.bf16.msra.mxu2 %v2930_v12  ;;  %2344 = vmatpush.bf16.msrb.mxu0 %v3490_v13  ;;  %v3840_v12 = vld [vmem:[#allocation8 + $0x12c] sm:$0xf]  ;;  %v2987_v13 = vld [vmem:[#allocation8 + $0x144] sm:$0xf0]  ;;  %v2878_v16 = vor.u32 %v3812_v7, %v2875_v8 }
 0x196   :  { %v2990_v22 = vor.u32 %v3840_v12, %v2987_v13  ;;  %v3435_v10 = vld [vmem:[#allocation8 + $0x4c4] sm:$0xf0]  ;;  %v3994_v13 = vld [vmem:[#allocation8 + $0x5fc] sm:$0xf] }
 0x197   :  { %2337 = vmatpush.bf16.msra.mxu3 %v3098_v21  ;;  %2359 = vmatpush.bf16.msrb.mxu1 %v3658_v23  ;;  %v3155_v21 = vld [vmem:[#allocation8 + $0x294] sm:$0xf0]  ;;  %v4022_v23 = vld [vmem:[#allocation8 + $0x6dc] sm:$0xf] }
 0x198   :  { %v3158_v30 = vor.u32 %v3882_v20, %v3155_v21  ;;  %v3718_v31 = vor.u32 %v4022_v23, %v3715_v24  ;;  %v3805_v20 = vld [vmem:[#allocation8 + $0x14] sm:$0xf]  ;;  %v2847_v21 = vld [vmem:[#allocation8 + $0x2c] sm:$0xf0]  ;;  %v3049_v24 = vld [vmem:[#allocation8 + $0x1a0] sm:$0xf] }
 0x199   :  { %2323 = vmatpush.bf16.msra.mxu2 %v2902_v27  ;;  %2345 = vmatpush.bf16.msrb.mxu0 %v3462_v28  ;;  %v3833_v27 = vld [vmem:[#allocation8 + $0xf4] sm:$0xf]  ;;  %v2959_v28 = vld [vmem:[#allocation8 + $0x10c] sm:$0xf0]  ;;  %v3050_v33 = vor.u32 %v3858_v25, %v3049_v24 }
 0x19a   :  { %v3407_v23 = vld [vmem:[#allocation8 + $0x48c] sm:$0xf0] }
 0x19b   :  { %2338 = vmatpush.bf16.msra.mxu3 %v3070_v35  ;;  %2360 = vmatpush.bf16.msrb.mxu1 %v3630_v36  ;;  %v2962_v35 = vor.u32 %v3833_v27, %v2959_v28  ;;  %v4015_v36 = vld [vmem:[#allocation8 + $0x6a4] sm:$0xf]  ;;  %v2850_v28 = vor.u32 %v3805_v20, %v2847_v21  ;;  %v3970_v20 = vld [vmem:[#allocation8 + $0x538] sm:$0xf0]  ;;  %v3105_v25 = vld [vmem:[#allocation8 + $0x210] sm:$0xf] }
 0x19d   :  { %2324 = vmatpush.bf16.msra.mxu2 %v2874_v40  ;;  %2346 = vmatpush.bf16.msrb.mxu0 %v3434_v42  ;;  %v3826_v40 = vld [vmem:[#allocation8 + $0xbc] sm:$0xf]  ;;  %v2931_v42 = vld [vmem:[#allocation8 + $0xd4] sm:$0xf0] }
 0x19e   :  { %2339 = vmatmul.bf16.vlgmr.msra.gmra.mxu3 %v4240_v1  ;;  %v2934_v48 = vor.u32 %v3826_v40, %v2931_v42 }
 0x19f   :  { %2383 = vmatpush.bf16.msrb.mxu3 %v3270_v37  ;;  %2361 = vmatpush.bf16.msrb.mxu1 %v3602_v51  ;;  %v3687_v37 = vld [vmem:[#allocation8 + $0x6bc] sm:$0xf0]  ;;  %v4008_v51 = vld [vmem:[#allocation8 + $0x66c] sm:$0xf] }
 0x1a0   :  { %v3690_v46 = vor.u32 %v4015_v36, %v3687_v37  ;;  %v3379_v36 = vld [vmem:[#allocation8 + $0x454] sm:$0xf0]  ;;  %v3021_v37 = vld [vmem:[#allocation8 + $0x168] sm:$0xf] }
 0x1a1   :  { %2325 = vmatpush.bf16.msra.mxu2 %v2846_v53  ;;  %2347 = vmatpush.bf16.msrb.mxu0 %v3406_v54  ;;  %v3659_v53 = vld [vmem:[#allocation8 + $0x684] sm:$0xf0]  ;;  %v3819_v54 = vld [vmem:[#allocation8 + $0x84] sm:$0xf] }
 0x1a2   :  { %v3662_v60 = vor.u32 %v4008_v51, %v3659_v53  ;;  %v2906_v62 = vor.u32 %v3819_v54, %v2903_v55  ;;  %v3844_v51 = vld [vmem:[#allocation8 + $0x148] sm:$0xf0]  ;;  %v3973_v53 = vld [vmem:[#allocation8 + $0x554] sm:$0xf] }
 0x1a3   :  { %2384 = vmatpush.bf16.msrb.mxu3 %v3242_v52  ;;  %2362 = vmatpush.bf16.msrb.mxu1 %v3574_v3  ;;  %v3494_v52 = vor.u32 %v3966_v43, %v3491_v44  ;;  %v3631_v3 = vld [vmem:[#allocation8 + $0x64c] sm:$0xf0]  ;;  %v3980_v43 = vld [vmem:[#allocation8 + $0x58c] sm:$0xf]  ;;  %v3547_v44 = vld [vmem:[#allocation8 + $0x5a4] sm:$0xf0] }
 0x1a4   :  { %2326 = vmatmul.bf16.vlgmr.msra.gmra.mxu2 %v4243_v15  ;;  %v3634_v11 = vor.u32 %v4001_v0, %v3631_v3  ;;  %v3323_v0 = vld [vmem:[#allocation8 + $0x3e4] sm:$0xf0]  ;;  %v2965_v3 = vld [vmem:[#allocation8 + $0xf8] sm:$0xf] }
 0x1a5   :  { %2370 = vmatpush.bf16.msrb.mxu2 %v3046_v58  ;;  %2348 = vmatpush.bf16.msrb.mxu0 %v3378_v6  ;;  %v3102_v58 = vor.u32 %v3868_v49, %v3099_v50  ;;  %v3273_v6 = vld [vmem:[#allocation8 + $0x360] sm:$0xf]  ;;  %v2993_v50 = vld [vmem:[#allocation8 + $0x130] sm:$0xf] }
 0x1a6   :  { %v3274_v12 = vor.u32 %v3914_v61, %v3273_v6  ;;  %v3351_v49 = vld [vmem:[#allocation8 + $0x41c] sm:$0xf0]  ;;  %v2994_v59 = vor.u32 %v3844_v51, %v2993_v50 }
 0x1a7   :  { %2385 = vmatpush.bf16.msrb.mxu3 %v3214_v5  ;;  %2363 = vmatpush.bf16.msrb.mxu1 %v3546_v14  ;;  %v3466_v5 = vor.u32 %v3959_v56, %v3463_v57  ;;  %v3603_v14 = vld [vmem:[#allocation8 + $0x614] sm:$0xf0]  ;;  %v3519_v56 = vld [vmem:[#allocation8 + $0x56c] sm:$0xf0]  ;;  %v3161_v57 = vld [vmem:[#allocation8 + $0x280] sm:$0xf] }
 0x1a8   :  { %v3606_v26 = vor.u32 %v3994_v13, %v3603_v14  ;;  %v3522_v6 = vor.u32 %v3973_v53, %v3519_v56  ;;  %v4019_v13 = vld [vmem:[#allocation8 + $0x6c0] sm:$0xf0]  ;;  %v3917_v14 = vld [vmem:[#allocation8 + $0x394] sm:$0xf]  ;;  %v3609_v53 = vld [vmem:[#allocation8 + $0x600] sm:$0xf] }
 0x1a9   :  { %2371 = vmatpush.bf16.msrb.mxu2 %v3018_v9  ;;  %2349 = vmatpush.bf16.msrb.mxu0 %v3350_v18  ;;  %v3952_v9 = vld [vmem:[#allocation8 + $0x4ac] sm:$0xf]  ;;  %v3245_v18 = vld [vmem:[#allocation8 + $0x328] sm:$0xf]  ;;  %v3998_v56 = vld [vmem:[#allocation8 + $0x618] sm:$0xf0] }
 0x1aa   :  { %v3246_v27 = vor.u32 %v3907_v19, %v3245_v18  ;;  %v3830_v18 = vld [vmem:[#allocation8 + $0xd8] sm:$0xf0]  ;;  %v3497_v19 = vld [vmem:[#allocation8 + $0x520] sm:$0xf] }
 0x1ab   :  { %2386 = vmatpush.bf16.msrb.mxu3 %v3186_v17  ;;  %2364 = vmatpush.bf16.msrb.mxu1 %v3518_v29  ;;  %v3438_v17 = vor.u32 %v3952_v9, %v3435_v10  ;;  %v3133_v9 = vld [vmem:[#allocation8 + $0x248] sm:$0xf]  ;;  %v3879_v10 = vld [vmem:[#allocation8 + $0x260] sm:$0xf0] }
 0x1ac   :  { %v3134_v21 = vor.u32 %v3879_v10, %v3133_v9  ;;  %v3581_v9 = vld [vmem:[#allocation8 + $0x5c8] sm:$0xf]  ;;  %v3991_v10 = vld [vmem:[#allocation8 + $0x5e0] sm:$0xf0] }
 0x1ad   :  { %2372 = vmatpush.bf16.msrb.mxu2 %v2990_v22  ;;  %2350 = vmatpush.bf16.msrb.mxu0 %v3322_v34  ;;  %v3945_v22 = vld [vmem:[#allocation8 + $0x474] sm:$0xf]  ;;  %v3900_v34 = vld [vmem:[#allocation8 + $0x308] sm:$0xf0] }
 0x1ae   :  { %2365 = vmatmul.bf16.vlgmr.msrb.gmra.mxu1 %v4246_v41  ;;  %v3410_v29 = vor.u32 %v3945_v22, %v3407_v23  ;;  %v3218_v40 = vor.u32 %v3900_v34, %v3217_v32  ;;  %v3823_v32 = vld [vmem:[#allocation8 + $0xa0] sm:$0xf0] }
 0x1af   :  { %2387 = vmatpush.bf16.msrb.mxu3 %v3158_v30  ;;  %2409 = vmatpush.bf16.msra.mxu1 %v3718_v31  ;;  %v3987_v30 = vld [vmem:[#allocation8 + $0x5c4] sm:$0xf]  ;;  %v3575_v31 = vld [vmem:[#allocation8 + $0x5dc] sm:$0xf0] }
 0x1b0   :  { %v3578_v39 = vor.u32 %v3987_v30, %v3575_v31  ;;  %v4012_v30 = vld [vmem:[#allocation8 + $0x688] sm:$0xf0]  ;;  %v2909_v31 = vld [vmem:[#allocation8 + $0x88] sm:$0xf]  ;;  %v3963_v34 = vld [vmem:[#allocation8 + $0x500] sm:$0xf0] }
 0x1b1   :  { %2373 = vmatpush.bf16.msrb.mxu2 %v2962_v35  ;;  %2351 = vmatpush.bf16.msrb.mxu0 %v3294_v47  ;;  %v3938_v35 = vld [vmem:[#allocation8 + $0x43c] sm:$0xf]  ;;  %v3893_v47 = vld [vmem:[#allocation8 + $0x2d0] sm:$0xf0] }
 0x1b2   :  { %v3382_v42 = vor.u32 %v3938_v35, %v3379_v36 }
 0x1b3   :  { %2388 = vmatpush.bf16.msrb.mxu3 %v3130_v45  ;;  %2410 = vmatpush.bf16.msra.mxu1 %v3690_v46  ;;  %v3189_v45 = vld [vmem:[#allocation8 + $0x2b8] sm:$0xf]  ;;  %v3022_v46 = vor.u32 %v3851_v38, %v3021_v37  ;;  %v2910_v38 = vor.u32 %v3823_v32, %v2909_v31 }
 0x1b4   :  { %2352 = vmatmul.bf16.vlgmr.msrb.gmra.mxu0 %v4250_v4  ;;  %v3190_v54 = vor.u32 %v3893_v47, %v3189_v45  ;;  %v4005_v45 = vld [vmem:[#allocation8 + $0x650] sm:$0xf0]  ;;  %v3816_v47 = vld [vmem:[#allocation8 + $0x68] sm:$0xf0] }
 0x1b5   :  { %2374 = vmatpush.bf16.msrb.mxu2 %v2934_v48  ;;  %2396 = vmatpush.bf16.msra.mxu0 %v3494_v52  ;;  %v3931_v48 = vld [vmem:[#allocation8 + $0x404] sm:$0xf]  ;;  %v3550_v52 = vor.u32 %v3980_v43, %v3547_v44 }
 0x1b6   :  { %v3354_v55 = vor.u32 %v3931_v48, %v3351_v49  ;;  %v3441_v48 = vld [vmem:[#allocation8 + $0x4b0] sm:$0xf]  ;;  %v3956_v49 = vld [vmem:[#allocation8 + $0x4c8] sm:$0xf0] }
 0x1b7   :  { %2389 = vmatpush.bf16.msrb.mxu3 %v3102_v58  ;;  %2411 = vmatpush.bf16.msra.mxu1 %v3662_v60  ;;  %v3886_v58 = vld [vmem:[#allocation8 + $0x298] sm:$0xf0]  ;;  %v3721_v60 = vld [vmem:[#allocation8 + $0x6e0] sm:$0xf] }
 0x1b8   :  { %v3162_v7 = vor.u32 %v3886_v58, %v3161_v57  ;;  %v2853_v57 = vld [vmem:[#allocation8 + $0x18] sm:$0xf]  ;;  %v3809_v58 = vld [vmem:[#allocation8 + $0x30] sm:$0xf0] }
 0x1b9   :  { %2375 = vmatpush.bf16.msrb.mxu2 %v2906_v62  ;;  %2397 = vmatpush.bf16.msra.mxu0 %v3466_v5  ;;  %v4026_v62 = vld [vmem:[#allocation8 + $0x6f8] sm:$0xf0]  ;;  %v3837_v5 = vld [vmem:[#allocation8 + $0x110] sm:$0xf0] }
 0x1ba   :  { %v3722_v8 = vor.u32 %v4026_v62, %v3721_v60  ;;  %v3413_v60 = vld [vmem:[#allocation8 + $0x478] sm:$0xf]  ;;  %v3949_v62 = vld [vmem:[#allocation8 + $0x490] sm:$0xf0] }
 0x1bb   :  { %2390 = vmatpush.bf16.msrb.mxu3 %v3074_v2  ;;  %2412 = vmatpush.bf16.msra.mxu1 %v3634_v11  ;;  %v3326_v2 = vor.u32 %v3924_v63, %v3323_v0  ;;  %v2966_v11 = vor.u32 %v3837_v5, %v2965_v3  ;;  %v3610_v5 = vor.u32 %v3998_v56, %v3609_v53 }
 0x1bd   :  { %2376 = vmatpush.bf16.msrb.mxu2 %v2878_v16  ;;  %2398 = vmatpush.bf16.msra.mxu0 %v3438_v17  ;;  %v3295_v16 = vld [vmem:[#allocation8 + $0x3ac] sm:$0xf0]  ;;  %v2937_v17 = vld [vmem:[#allocation8 + $0xc0] sm:$0xf] }
 0x1be   :  { %2391 = vmatmul.bf16.vlgmr.msrb.gmra.mxu3 %v4240_v1  ;;  %v3298_v23 = vor.u32 %v3917_v14, %v3295_v16  ;;  %v2938_v24 = vor.u32 %v3830_v18, %v2937_v17  ;;  %v3553_v16 = vld [vmem:[#allocation8 + $0x590] sm:$0xf]  ;;  %v3984_v17 = vld [vmem:[#allocation8 + $0x5a8] sm:$0xf0]  ;;  %v3357_v18 = vld [vmem:[#allocation8 + $0x408] sm:$0xf] }
 0x1bf   :  { %2435 = vmatpush.bf16.msra.mxu3 %v3274_v12  ;;  %2413 = vmatpush.bf16.msra.mxu1 %v3606_v26  ;;  %v3693_v12 = vld [vmem:[#allocation8 + $0x6a8] sm:$0xf]  ;;  %v3872_v26 = vld [vmem:[#allocation8 + $0x228] sm:$0xf0] }
 0x1c0   :  { %v3694_v22 = vor.u32 %v4019_v13, %v3693_v12  ;;  %v3106_v36 = vor.u32 %v3872_v26, %v3105_v25  ;;  %v3582_v12 = vor.u32 %v3991_v10, %v3581_v9  ;;  %v3977_v25 = vld [vmem:[#allocation8 + $0x570] sm:$0xf0] }
 0x1c1   :  { %2377 = vmatpush.bf16.msrb.mxu2 %v2850_v28  ;;  %2399 = vmatpush.bf16.msra.mxu0 %v3410_v29  ;;  %v4270_v61 = vpop.f32.mrf.mxu3  ;;  %v3498_v29 = vor.u32 %v3970_v20, %v3497_v19  ;;  %v3935_v19 = vld [vmem:[#allocation8 + $0x420] sm:$0xf0] }
 0x1c3   :  { %2436 = vmatpush.bf16.msra.mxu3 %v3246_v27  ;;  %2414 = vmatpush.bf16.msra.mxu1 %v3578_v39  ;;  %v3665_v27 = vld [vmem:[#allocation8 + $0x670] sm:$0xf]  ;;  %v3077_v39 = vld [vmem:[#allocation8 + $0x1d8] sm:$0xf] }
 0x1c4   :  { %2378 = vmatmul.bf16.vlgmr.msrb.gmra.mxu2 %v4243_v15  ;;  %v3666_v37 = vor.u32 %v4012_v30, %v3665_v27  ;;  %v3329_v27 = vld [vmem:[#allocation8 + $0x3d0] sm:$0xf] }
 0x1c5   :  { %2422 = vmatpush.bf16.msra.mxu2 %v3050_v33  ;;  %2400 = vmatpush.bf16.msra.mxu0 %v3382_v42  ;;  %v3469_v33 = vld [vmem:[#allocation8 + $0x4e8] sm:$0xf]  ;;  %v3637_v42 = vld [vmem:[#allocation8 + $0x638] sm:$0xf] }
 0x1c6   :  { %v3470_v44 = vor.u32 %v3963_v34, %v3469_v33  ;;  %v3638_v51 = vor.u32 %v4005_v45, %v3637_v42  ;;  %v3921_v33 = vld [vmem:[#allocation8 + $0x3b0] sm:$0xf0] }
 0x1c7   :  { %2437 = vmatpush.bf16.msra.mxu3 %v3218_v40  ;;  %2415 = vmatpush.bf16.msra.mxu1 %v3550_v52  ;;  %v2119_v28 = vpop.f32.mrf.mxu2  ;;  %v3865_v40 = vld [vmem:[#allocation8 + $0x1f0] sm:$0xf0] }
 0x1c8   :  { %v3078_v50 = vor.u32 %v3865_v40, %v3077_v39 }
 0x1c9   :  { %2423 = vmatpush.bf16.msra.mxu2 %v3022_v46  ;;  %2401 = vmatpush.bf16.msra.mxu0 %v3354_v55  ;;  %v2134_v35 = vpop.f32.mrf.mxu3  ;;  %v2881_v46 = vld [vmem:[#allocation8 + $0x50] sm:$0xf]  ;;  %v3442_v55 = vor.u32 %v3956_v49, %v3441_v48 }
 0x1ca   :  { %v2882_v52 = vor.u32 %v3816_v47, %v2881_v46 }
 0x1cb   :  { %2438 = vmatpush.bf16.msra.mxu3 %v3190_v54  ;;  %2416 = vmatpush.bf16.msra.mxu1 %v3522_v6  ;;  %v2158_v43 = vpop.f32.mrf.mxu1  ;;  %v2854_v6 = vor.u32 %v3809_v58, %v2853_v57 }
 0x1cd   :  { %2424 = vmatpush.bf16.msra.mxu2 %v2994_v59  ;;  %2402 = vmatpush.bf16.msra.mxu0 %v3326_v2  ;;  %v2133_v59 = vadd.f32 %v4270_v61, %v2119_v28  ;;  %v3942_v61 = vld [vmem:[#allocation8 + $0x458] sm:$0xf0]  ;;  %v3928_v28 = vld [vmem:[#allocation8 + $0x3e8] sm:$0xf0] }
 0x1ce   :  { %2417 = vmatmul.bf16.vlgmr.msra.gmra.mxu1 %v4246_v41  ;;  %v3330_v31 = vor.u32 %v3928_v28, %v3329_v27 }
 0x1cf   :  { %2439 = vmatpush.bf16.msra.mxu3 %v3162_v7  ;;  %2461 = vmatpush.bf16.msrb.mxu1 %v3722_v8  ;;  %v2121_v54 = vpop.f32.mrf.mxu2  ;;  %v3414_v8 = vor.u32 %v3949_v62, %v3413_v60 }
 0x1d1   :  { %2425 = vmatpush.bf16.msra.mxu2 %v2966_v11  ;;  %2403 = vmatpush.bf16.msra.mxu0 %v3298_v23  ;;  %v2145_v63 = vpop.f32.mrf.mxu0  ;;  %v2184_v0 = vpop.f32.mrf.mxu3  ;;  %v3385_v11 = vld [vmem:[#allocation8 + $0x440] sm:$0xf]  ;;  %v3358_v23 = vor.u32 %v3935_v19, %v3357_v18 }
 0x1d2   :  { %v2146_v3 = vadd.f32 %v2145_v63, %v2133_v59  ;;  %v3386_v14 = vor.u32 %v3942_v61, %v3385_v11 }
 0x1d3   :  { %2440 = vmatpush.bf16.msra.mxu3 %v3134_v21  ;;  %2462 = vmatpush.bf16.msrb.mxu1 %v3694_v22  ;;  %v2160_v7 = vpop.f32.mrf.mxu1  ;;  %v3554_v22 = vor.u32 %v3984_v17, %v3553_v16 }
 0x1d4   :  { %2404 = vmatmul.bf16.vlgmr.msra.gmra.mxu0 %v4250_v4  ;;  %v2159_v2 = vadd.f32 %v2158_v43, %v2146_v3 }
 0x1d5   :  { %2426 = vmatpush.bf16.msra.mxu2 %v2938_v24  ;;  %2448 = vmatpush.bf16.msrb.mxu0 %v3498_v29  ;;  %v3525_v24 = vld [vmem:[#allocation8 + $0x558] sm:$0xf] }
 0x1d6   :  { %4038 = vtanh.f32 %v2159_v2  ;;  %v3526_v29 = vor.u32 %v3977_v25, %v3525_v24 }
 0x1d7   :  { %2441 = vmatpush.bf16.msra.mxu3 %v3106_v36  ;;  %2463 = vmatpush.bf16.msrb.mxu1 %v3666_v37  ;;  %v2171_v13 = vpop.f32.mrf.mxu2 }
 0x1d8   :  { %v2185_v32 = vadd.f32 %v2184_v0, %v2171_v13 }
 0x1d9   :  { %2427 = vmatpush.bf16.msra.mxu2 %v2910_v38  ;;  %2449 = vmatpush.bf16.msrb.mxu0 %v3470_v44  ;;  %v2147_v20 = vpop.f32.mrf.mxu0  ;;  %v2186_v21 = vpop.f32.mrf.mxu3 }
 0x1db   :  { %2442 = vmatpush.bf16.msra.mxu3 %v3078_v50  ;;  %2464 = vmatpush.bf16.msrb.mxu1 %v3638_v51 }
 0x1dc   :  { %v4039_v26 = vpop.eup %4038 }
 0x1dd   :  { %2428 = vmatpush.bf16.msra.mxu2 %v2882_v52  ;;  %2450 = vmatpush.bf16.msrb.mxu0 %v3442_v55  ;;  %2481 = vst [vmem:[#allocation10] sm:$0xff] %v4039_v26 }
 0x1de   :  { %2443 = vmatmul.bf16.vlgmr.msra.gmra.mxu3 %v4240_v1  ;;  %v2210_v1 = vpop.f32.mrf.mxu1 }
 0x1df   :  { %2465 = vmatpush.bf16.msrb.mxu1 %v3610_v5  ;;  %v2173_v30 = vpop.f32.mrf.mxu2 }
 0x1e1   :  { %2429 = vmatpush.bf16.msra.mxu2 %v2854_v6  ;;  %2451 = vmatpush.bf16.msrb.mxu0 %v3414_v8  ;;  %v2197_v34 = vpop.f32.mrf.mxu0  ;;  %v2236_v35 = vpop.f32.mrf.mxu3 }
 0x1e2   :  { %v2198_v36 = vadd.f32 %v2197_v34, %v2185_v32 }
 0x1e3   :  { %2466 = vmatpush.bf16.msrb.mxu1 %v3582_v12 }
 0x1e4   :  { %2430 = vmatmul.bf16.vlgmr.msra.gmra.mxu2 %v4243_v15  ;;  %v3301_v15 = vld [vmem:[#allocation8 + $0x398] sm:$0xf]  ;;  %v2211_v39 = vadd.f32 %v2210_v1, %v2198_v36 }
 0x1e5   :  { %2452 = vmatpush.bf16.msrb.mxu0 %v3386_v14  ;;  %v3302_v38 = vor.u32 %v3921_v33, %v3301_v15 }
 0x1e6   :  { %v2212_v37 = vpop.f32.mrf.mxu1  ;;  %4040 = vtanh.f32 %v2211_v39 }
 0x1e7   :  { %2467 = vmatpush.bf16.msrb.mxu1 %v3554_v22  ;;  %v2223_v40 = vpop.f32.mrf.mxu2 }
 0x1e8   :  { %v2237_v47 = vadd.f32 %v2236_v35, %v2223_v40 }
 0x1e9   :  { %2453 = vmatpush.bf16.msrb.mxu0 %v3358_v23  ;;  %v2199_v42 = vpop.f32.mrf.mxu0  ;;  %v2238_v43 = vpop.f32.mrf.mxu3 }
 0x1eb   :  { %2468 = vmatpush.bf16.msrb.mxu1 %v3526_v29 }
 0x1ec   :  { %v4041_v45 = vpop.eup %4040 }
 0x1ed   :  { %2454 = vmatpush.bf16.msrb.mxu0 %v3330_v31  ;;  %2482 = vst [vmem:[#allocation10 + $0x8] sm:$0xff] %v4041_v45 }
 0x1ee   :  { %2469 = vmatmul.bf16.vlgmr.msrb.gmra.mxu1 %v4246_v41  ;;  %v2262_v44 = vpop.f32.mrf.mxu1 }
 0x1ef   :  { %v2225_v46 = vpop.f32.mrf.mxu2 }
 0x1f1   :  { %2455 = vmatpush.bf16.msrb.mxu0 %v3302_v38  ;;  %v2249_v48 = vpop.f32.mrf.mxu0 }
 0x1f2   :  { %v2250_v49 = vadd.f32 %v2249_v48, %v2237_v47 }
 0x1f4   :  { %2456 = vmatmul.bf16.vlgmr.msrb.gmra.mxu0 %v4250_v4  ;;  %v2263_v51 = vadd.f32 %v2262_v44, %v2250_v49 }
 0x1f6   :  { %v2264_v50 = vpop.f32.mrf.mxu1  ;;  %4042 = vtanh.f32 %v2263_v51 }
 0x1f9   :  { %v2251_v52 = vpop.f32.mrf.mxu0 }
 0x1fc   :  { %v4043_v53 = vpop.eup %4042 }
 0x1fd   :  { %2483 = vst [vmem:[#allocation10 + $0x10] sm:$0xff] %v4043_v53 }
 0x201   :  { %v2288_v41 = vpop.f32.mrf.mxu3 }
 0x207   :  { %v2275_v54 = vpop.f32.mrf.mxu2 }
 0x208   :  { %v2289_v58 = vadd.f32 %v2288_v41, %v2275_v54 }
 0x209   :  { %v2290_v55 = vpop.f32.mrf.mxu3 }
 0x20b   :  { %v2314_v56 = vpop.f32.mrf.mxu1 }
 0x20f   :  { %v2277_v57 = vpop.f32.mrf.mxu2 }
 0x211   :  { %v2301_v4 = vpop.f32.mrf.mxu0 }
 0x212   :  { %v2302_v59 = vadd.f32 %v2301_v4, %v2289_v58 }
 0x213   :  { %v2316_v60 = vpop.f32.mrf.mxu1 }
 0x214   :  { %v2315_v62 = vadd.f32 %v2314_v56, %v2302_v59 }
 0x216   :  { %4044 = vtanh.f32 %v2315_v62 }
 0x219   :  { %v2303_v63 = vpop.f32.mrf.mxu0 }
 0x21c   :  { %v4045_v0 = vpop.eup %4044 }
 0x21d   :  { %2484 = vst [vmem:[#allocation10 + $0x18] sm:$0xff] %v4045_v0 }
 0x221   :  { %v2340_v3 = vpop.f32.mrf.mxu3 }
 0x227   :  { %v2327_v5 = vpop.f32.mrf.mxu2 }
 0x228   :  { %v2341_v9 = vadd.f32 %v2340_v3, %v2327_v5 }
 0x229   :  { %v2342_v6 = vpop.f32.mrf.mxu3 }
 0x22b   :  { %v2366_v7 = vpop.f32.mrf.mxu1 }
 0x22f   :  { %v2329_v8 = vpop.f32.mrf.mxu2 }
 0x231   :  { %v2353_v10 = vpop.f32.mrf.mxu0 }
 0x232   :  { %v2354_v2 = vadd.f32 %v2353_v10, %v2341_v9 }
 0x233   :  { %v2368_v11 = vpop.f32.mrf.mxu1 }
 0x234   :  { %v2367_v61 = vadd.f32 %v2366_v7, %v2354_v2 }
 0x236   :  { %4046 = vtanh.f32 %v2367_v61 }
 0x239   :  { %v2355_v12 = vpop.f32.mrf.mxu0 }
 0x23c   :  { %v4047_v13 = vpop.eup %4046 }
 0x23d   :  { %2485 = vst [vmem:[#allocation10 + $0x20] sm:$0xff] %v4047_v13 }
 0x241   :  { %v2392_v14 = vpop.f32.mrf.mxu3 }
 0x247   :  { %v2379_v16 = vpop.f32.mrf.mxu2 }
 0x248   :  { %v2393_v20 = vadd.f32 %v2392_v14, %v2379_v16 }
 0x249   :  { %v2394_v17 = vpop.f32.mrf.mxu3 }
 0x24b   :  { %v2418_v18 = vpop.f32.mrf.mxu1 }
 0x24f   :  { %v2381_v19 = vpop.f32.mrf.mxu2 }
 0x251   :  { %v2405_v21 = vpop.f32.mrf.mxu0 }
 0x252   :  { %v2406_v22 = vadd.f32 %v2405_v21, %v2393_v20 }
 0x253   :  { %v2420_v1 = vpop.f32.mrf.mxu1 }
 0x254   :  { %v2419_v23 = vadd.f32 %v2418_v18, %v2406_v22 }
 0x256   :  { %4048 = vtanh.f32 %v2419_v23 }
 0x259   :  { %v2407_v24 = vpop.f32.mrf.mxu0 }
 0x25c   :  { %v4049_v25 = vpop.eup %4048 }
 0x25d   :  { %2486 = vst [vmem:[#allocation10 + $0x28] sm:$0xff] %v4049_v25 }
 0x261   :  { %v2444_v26 = vpop.f32.mrf.mxu3 }
 0x267   :  { %v2431_v27 = vpop.f32.mrf.mxu2 }
 0x268   :  { %v2445_v31 = vadd.f32 %v2444_v26, %v2431_v27 }
 0x269   :  { %v2446_v28 = vpop.f32.mrf.mxu3 }
 0x26b   :  { %v2470_v29 = vpop.f32.mrf.mxu1 }
 0x26f   :  { %v2433_v30 = vpop.f32.mrf.mxu2 }
 0x271   :  { %v2457_v32 = vpop.f32.mrf.mxu0 }
 0x272   :  { %v2458_v15 = vadd.f32 %v2457_v32, %v2445_v31 }
 0x273   :  { %v2472_v34 = vpop.f32.mrf.mxu1 }
 0x274   :  { %v2471_v33 = vadd.f32 %v2470_v29, %v2458_v15 }
 0x276   :  { %4050 = vtanh.f32 %v2471_v33 }
 0x279   :  { %v2459_v35 = vpop.f32.mrf.mxu0 }
 0x27c   :  { %v4051_v36 = vpop.eup %4050 }
 0x27d   :  { %2487 = vst [vmem:[#allocation10 + $0x30] sm:$0xff] %v4051_v36 }
 0x27e   :  { %2498 = dma.vmem_to_hbm [thread:$0]  %s2494_s3, 896, %s2496_s15, [#allocation4]  }
 0x27f   :  { %4178 = dma.done.wait [#allocation4], 896  }
 0x280   :  { %4179 = vsyncadd [#allocation4], 4294966400 }
 0x281   :  { %2503 = vsyncpa [#allocation3], 1 }
 0x282   :  { %2504 = vsyncpa [#allocation6], 1 }
 0x283   :  { %2505 = vsyncpa [#allocation9], 1 }
 0x284   :  { %2506 = vsyncpa [#allocation4], 1 }

</bundles_post_ra>
